<compile_context>
chip_gen: v5e
topology: v5e:2x2
jax: 0.10.0
libtpu: 0.0.40
codegen_flags: <defaults>
</compile_context>

<pallas_src>
import functools

import jax
import jax.numpy as jnp
from jax import lax
from jax.experimental import pallas as pl
from jax.experimental.pallas import tpu as pltpu

EPS = 1e-5
_MM_DTYPE = jnp.bfloat16   # MXU input dtype; accumulation is always f32.


def _layer_norm(x, gamma, beta):
    mean = jnp.mean(x, axis=-1, keepdims=True)
    var = jnp.mean((x - mean) ** 2, axis=-1, keepdims=True)
    return (x - mean) * lax.rsqrt(var + EPS) * gamma + beta


def transformer_layer_kernel(
    # inputs
    xp_ref,    # [S, D]  bf16   x + pos (host-precomputed)  -- Q/K input
    xv_ref,    # [S, D]  bf16   x                           -- V input
    xr_ref,    # [TQ, D] f32    x residual tile
    wq_ref, bq_ref, wk_ref, bk_ref, wv_ref, bv_ref,
    wo_ref, bo_ref, w1_ref, bf1_ref, w2_ref, bf2_ref,
    g1_ref, be1_ref, g2_ref, be2_ref,
    # output
    o_ref,     # [TQ, D]
    # scratch
    k_scr, v_scr, attn_scr,
    *, num_heads):
    """Grid = (batch, query_tile).  K/V are projected once per batch (qi == 0) and
    cached in VMEM scratch; every projection / FFN matmul is a full-width 2-D
    bf16 x bf16 -> f32 MXU op."""
    qi = pl.program_id(1)
    tq, d_model = o_ref.shape
    hd = d_model // num_heads
    f32 = jnp.float32

    # ---- K / V projections: once per batch, cached across query tiles -------
    @pl.when(qi == 0)
    def _project_kv():
        k = jnp.dot(xp_ref[...], wk_ref[...], preferred_element_type=f32) + bk_ref[...]
        v = jnp.dot(xv_ref[...], wv_ref[...], preferred_element_type=f32) + bv_ref[...]
        k_scr[...] = k.astype(k_scr.dtype)
        v_scr[...] = v.astype(v_scr.dtype)

    # ---- Q projection for this query tile (1/sqrt(hd) folded into wq/bq) ----
    q_start = pl.multiple_of(qi * tq, tq)
    q_in = xp_ref[pl.ds(q_start, tq), :]                                       # [TQ, D] bf16
    q = jnp.dot(q_in, wq_ref[...], preferred_element_type=f32) + bq_ref[...]   # [TQ, D] f32

    # ---- per-head attention, packed into a [TQ, D] scratch ------------------
    # TODO(synk): attn_mask / key_padding_mask not modeled (None in this config).
    for h in range(num_heads):
        c0, c1 = h * hd, (h + 1) * hd
        q_h = q[:, c0:c1].astype(_MM_DTYPE)                                    # [TQ, hd]
        k_h = k_scr[:, c0:c1]                                                  # [S, hd]
        v_h = v_scr[:, c0:c1]                                                  # [S, hd]
        s = lax.dot_general(q_h, k_h, (((1,), (1,)), ((), ())),
                            preferred_element_type=f32)                        # [TQ, S]
        s = s - jnp.max(s, axis=-1, keepdims=True)
        p = jnp.exp(s)
        inv_l = pl.reciprocal(jnp.sum(p, axis=-1, keepdims=True), approx=True)
        attn_h = jnp.dot(p.astype(_MM_DTYPE), v_h,
                         preferred_element_type=f32) * inv_l                   # [TQ, hd]
        attn_scr[:, c0:c1] = attn_h.astype(attn_scr.dtype)

    # ---- output projection (single full-K matmul) + residual + norm1 --------
    attn_out = jnp.dot(attn_scr[...], wo_ref[...],
                       preferred_element_type=f32) + bo_ref[...]               # [TQ, D]
    x1 = _layer_norm(xr_ref[...].astype(f32) + attn_out, g1_ref[...], be1_ref[...])

    # ---- FFN (Linear -> ReLU -> [Dropout=id] -> Linear) + residual + norm2 --
    h1 = jnp.maximum(
        jnp.dot(x1.astype(_MM_DTYPE), w1_ref[...], preferred_element_type=f32)
        + bf1_ref[...], 0.0)
    ffn = jnp.dot(h1.astype(_MM_DTYPE), w2_ref[...],
                  preferred_element_type=f32) + bf2_ref[...]
    x2 = _layer_norm(x1 + ffn, g2_ref[...], be2_ref[...])

    # ---- second 'norm' reuses norm1 (matches the PyTorch operation loop) ----
    o_ref[...] = _layer_norm(x2, g1_ref[...], be1_ref[...]).astype(o_ref.dtype)


def _pick_q_tile(seq_len, max_tile=256):
    for t in (256, 128, 64, 32, 16, 8):
        if t <= max_tile and seq_len % t == 0:
            return t
    return seq_len


def base_transformer_layer(x, pos, params, num_heads, q_tile=None):
    B, S, D = x.shape
    assert D % num_heads == 0, "embed_dims must be divisible by num_heads"
    hd = D // num_heads
    FF = params["w1"].shape[1]
    f32 = jnp.float32
    scale = 1.0 / (hd ** 0.5)

    if q_tile is None:
        q_tile = _pick_q_tile(S)
    if S % q_tile != 0:
        q_tile = S
    n_q = S // q_tile

    # ---- host-side prep (one-time per layer in a real deployment) -----------
    xp = (x.astype(f32) + pos.astype(f32)).astype(_MM_DTYPE)   # x + pos (Q/K input)
    xv = x.astype(_MM_DTYPE)                                   # x (V input)

    weight_arrays = [
        (params["wq"] * scale).astype(_MM_DTYPE), (params["bq"] * scale).astype(f32),
        params["wk"].astype(_MM_DTYPE), params["bk"].astype(f32),
        params["wv"].astype(_MM_DTYPE), params["bv"].astype(f32),
        params["wo"].astype(_MM_DTYPE), params["bo"].astype(f32),
        params["w1"].astype(_MM_DTYPE), params["bf1"].astype(f32),
        params["w2"].astype(_MM_DTYPE), params["bf2"].astype(f32),
        params["g1"].astype(f32), params["be1"].astype(f32),
        params["g2"].astype(f32), params["be2"].astype(f32),
    ]

    def const_spec(arr):
        nd = arr.ndim
        # Constant block index -> fetched once, then resident for the whole call.
        return pl.BlockSpec(arr.shape, lambda b, qi, _nd=nd: (0,) * _nd)

    in_specs = (
        [pl.BlockSpec((None, S, D), lambda b, qi: (b, 0, 0)),        # x+pos (full seq, bf16)
         pl.BlockSpec((None, S, D), lambda b, qi: (b, 0, 0)),        # x (full seq, bf16)
         pl.BlockSpec((None, q_tile, D), lambda b, qi: (b, qi, 0))]  # x residual tile (f32)
        + [const_spec(a) for a in weight_arrays])
    out_spec = pl.BlockSpec((None, q_tile, D), lambda b, qi: (b, qi, 0))

    # ---- VMEM budget (blocks are double-buffered by default) ----------------
    itemsize = x.dtype.itemsize
    weight_bytes = sum(int(a.size) * a.dtype.itemsize for a in weight_arrays)
    est = (
        2 * 2 * S * D * 2                 # xp / xv bf16 blocks
        + 2 * q_tile * D * itemsize       # residual tile
        + 2 * q_tile * D * itemsize       # output tile
        + 2 * weight_bytes                # resident weights (worst case 2 buffers)
        + 2 * S * D * 2 + q_tile * D * 2  # K / V / packed-attention scratch (bf16)
        + 2 * S * D * 4                   # f32 K/V accumulations at qi == 0
        + 2 * q_tile * S * 4              # per-head scores / probs (f32)
        + q_tile * FF * 4                 # FFN hidden activations
        + 8 * q_tile * D * 4)             # misc f32 temporaries
    try:
        info = pltpu.get_tpu_info()
        vmem_cap = int(getattr(info, "vmem_capacity_bytes", 64 * 1024 * 1024))
    except Exception:
        vmem_cap = 64 * 1024 * 1024       # conservative fallback (v7x per-TC VMEM)
    vmem_limit = int(min(int(0.85 * vmem_cap),
                         max(32 * 1024 * 1024, int(1.3 * est))))

    # ---- advisory cost estimate for the XLA scheduler ------------------------
    flops = int(
        2 * 2 * B * S * D * D             # K, V projections (once per batch)
        + 2 * B * S * D * D               # Q projection
        + 4 * B * S * S * D               # QK^T + PV over all heads
        + 2 * B * S * D * D               # output projection
        + 4 * B * S * D * FF)             # FFN
    transcendentals = int(B * num_heads * S * S + 3 * B * S)
    bytes_accessed = int((2 * 2 + 2 * itemsize) * B * S * D + weight_bytes)

    kernel = functools.partial(transformer_layer_kernel, num_heads=num_heads)

    return pl.pallas_call(
        kernel,
        out_shape=jax.ShapeDtypeStruct((B, S, D), x.dtype),
        grid_spec=pltpu.PrefetchScalarGridSpec(
            num_scalar_prefetch=0,
            grid=(B, n_q),
            in_specs=in_specs,
            out_specs=out_spec,
            scratch_shapes=[
                pltpu.VMEM((S, D), _MM_DTYPE),       # K cache (per batch)
                pltpu.VMEM((S, D), _MM_DTYPE),       # V cache (per batch)
                pltpu.VMEM((q_tile, D), _MM_DTYPE),  # packed per-head attention
            ]),
        compiler_params=pltpu.CompilerParams(
            # qi must be 'arbitrary': the K/V cache is filled at qi == 0 and
            # reused by later query tiles of the same batch.
            dimension_semantics=("parallel", "arbitrary"),
            vmem_limit_bytes=vmem_limit),
        cost_estimate=pl.CostEstimate(
            flops=flops, transcendentals=transcendentals,
            bytes_accessed=bytes_accessed),
    )(xp, xv, x, *weight_arrays)


def ref_forward(x, pos, p, num_heads):
    """Pure-JAX f32 reference of the same forward pass."""
    B, S, D = x.shape
    hd = D // num_heads
    scale = 1.0 / (hd ** 0.5)

    def ln(v, g, b):
        m = jnp.mean(v, axis=-1, keepdims=True)
        var = jnp.mean((v - m) ** 2, axis=-1, keepdims=True)
        return (v - m) * lax.rsqrt(var + EPS) * g + b

    q = (x + pos) @ p["wq"] + p["bq"]
    k = (x + pos) @ p["wk"] + p["bk"]
    v = x @ p["wv"] + p["bv"]
    q = q.reshape(B, S, num_heads, hd)
    k = k.reshape(B, S, num_heads, hd)
    v = v.reshape(B, S, num_heads, hd)
    s = jnp.einsum("bqhd,bkhd->bhqk", q, k) * scale
    pr = jax.nn.softmax(s, axis=-1)
    attn = jnp.einsum("bhqk,bkhd->bqhd", pr, v).reshape(B, S, D)
    attn = attn @ p["wo"] + p["bo"]

    x1 = ln(x + attn, p["g1"], p["be1"])
    h = jnp.maximum(x1 @ p["w1"] + p["bf1"], 0.0)
    f = h @ p["w2"] + p["bf2"]
    x2 = ln(x1 + f, p["g2"], p["be2"])
    return ln(x2, p["g1"], p["be1"])


if __name__ == "__main__":
    B, S, D, H, FF = 2, 16, 32, 4, 64

    key = jax.random.PRNGKey(0)
    ks = jax.random.split(key, 16)

    def w(k, shape, scale=0.1):
        return (scale * jax.random.normal(k, shape)).astype(jnp.float32)

    params = {
        "wq": w(ks[0], (D, D)), "bq": w(ks[1], (1, D)),
        "wk": w(ks[2], (D, D)), "bk": w(ks[3], (1, D)),
        "wv": w(ks[4], (D, D)), "bv": w(ks[5], (1, D)),
        "wo": w(ks[6], (D, D)), "bo": w(ks[7], (1, D)),
        "w1": w(ks[8], (D, FF)), "bf1": w(ks[9], (1, FF)),
        "w2": w(ks[10], (FF, D)), "bf2": w(ks[11], (1, D)),
        "g1": jnp.ones((1, D), jnp.float32), "be1": jnp.zeros((1, D), jnp.float32),
        "g2": jnp.ones((1, D), jnp.float32), "be2": jnp.zeros((1, D), jnp.float32),
    }

    x = jax.random.normal(ks[12], (B, S, D), dtype=jnp.float32)
    pos = jax.random.normal(ks[13], (B, S, D), dtype=jnp.float32)

    # q_tile=8 (< S) deliberately exercises the K/V-cache reuse across query tiles.
    out = jax.block_until_ready(
        base_transformer_layer(x, pos, params, num_heads=H, q_tile=8))
    ref = ref_forward(x, pos, params, num_heads=H)

    assert out.shape == (B, S, D)
    # Kernel uses bf16 MXU inputs (f32 accumulation) vs the pure-f32 reference,
    # so compare with a bf16-appropriate tolerance.
    assert jnp.allclose(out, ref, atol=5e-2, rtol=5e-2), \
        "mismatch vs pure-JAX reference"

    print("KERNEL_OK")
</pallas_src>

<mosaic_0001>
module attributes {stable_mosaic.version = 11 : i64} {
  func.func @transformer_layer_kernel(%arg0: i32, %arg1: i32, %arg2: memref<1x16x32xbf16, #tpu.memory_space<vmem>>, %arg3: memref<1x16x32xbf16, #tpu.memory_space<vmem>>, %arg4: memref<1x8x32xf32, #tpu.memory_space<vmem>>, %arg5: memref<32x32xbf16, #tpu.memory_space<vmem>>, %arg6: memref<1x32xf32, #tpu.memory_space<vmem>>, %arg7: memref<32x32xbf16, #tpu.memory_space<vmem>>, %arg8: memref<1x32xf32, #tpu.memory_space<vmem>>, %arg9: memref<32x32xbf16, #tpu.memory_space<vmem>>, %arg10: memref<1x32xf32, #tpu.memory_space<vmem>>, %arg11: memref<32x32xbf16, #tpu.memory_space<vmem>>, %arg12: memref<1x32xf32, #tpu.memory_space<vmem>>, %arg13: memref<32x64xbf16, #tpu.memory_space<vmem>>, %arg14: memref<1x64xf32, #tpu.memory_space<vmem>>, %arg15: memref<64x32xbf16, #tpu.memory_space<vmem>>, %arg16: memref<1x32xf32, #tpu.memory_space<vmem>>, %arg17: memref<1x32xf32, #tpu.memory_space<vmem>>, %arg18: memref<1x32xf32, #tpu.memory_space<vmem>>, %arg19: memref<1x32xf32, #tpu.memory_space<vmem>>, %arg20: memref<1x32xf32, #tpu.memory_space<vmem>>, %arg21: memref<1x8x32xf32, #tpu.memory_space<vmem>>, %arg22: memref<16x32xbf16, #tpu.memory_space<vmem>>, %arg23: memref<16x32xbf16, #tpu.memory_space<vmem>>, %arg24: memref<8x32xbf16, #tpu.memory_space<vmem>>) attributes {dimension_semantics = [#tpu.dimension_semantics<parallel>, #tpu.dimension_semantics<arbitrary>], iteration_bounds = array<i64: 2, 2>, scalar_prefetch = 0 : i64, scratch_operands = 3 : i64, tpu.core_type = #tpu.core_type<tc>, window_params = [{transform_indices = @transform_0, window_bounds = array<i64: 1, 16, 32>}, {transform_indices = @transform_1, window_bounds = array<i64: 1, 16, 32>}, {transform_indices = @transform_2, window_bounds = array<i64: 1, 8, 32>}, {pipeline_mode = #tpu.pipeline_mode<synchronous>, transform_indices = @transform_3, window_bounds = array<i64: 32, 32>}, {pipeline_mode = #tpu.pipeline_mode<synchronous>, transform_indices = @transform_4, window_bounds = array<i64: 1, 32>}, {pipeline_mode = #tpu.pipeline_mode<synchronous>, transform_indices = @transform_5, window_bounds = array<i64: 32, 32>}, {pipeline_mode = #tpu.pipeline_mode<synchronous>, transform_indices = @transform_6, window_bounds = array<i64: 1, 32>}, {pipeline_mode = #tpu.pipeline_mode<synchronous>, transform_indices = @transform_7, window_bounds = array<i64: 32, 32>}, {pipeline_mode = #tpu.pipeline_mode<synchronous>, transform_indices = @transform_8, window_bounds = array<i64: 1, 32>}, {pipeline_mode = #tpu.pipeline_mode<synchronous>, transform_indices = @transform_9, window_bounds = array<i64: 32, 32>}, {pipeline_mode = #tpu.pipeline_mode<synchronous>, transform_indices = @transform_10, window_bounds = array<i64: 1, 32>}, {pipeline_mode = #tpu.pipeline_mode<synchronous>, transform_indices = @transform_11, window_bounds = array<i64: 32, 64>}, {pipeline_mode = #tpu.pipeline_mode<synchronous>, transform_indices = @transform_12, window_bounds = array<i64: 1, 64>}, {pipeline_mode = #tpu.pipeline_mode<synchronous>, transform_indices = @transform_13, window_bounds = array<i64: 64, 32>}, {pipeline_mode = #tpu.pipeline_mode<synchronous>, transform_indices = @transform_14, window_bounds = array<i64: 1, 32>}, {pipeline_mode = #tpu.pipeline_mode<synchronous>, transform_indices = @transform_15, window_bounds = array<i64: 1, 32>}, {pipeline_mode = #tpu.pipeline_mode<synchronous>, transform_indices = @transform_16, window_bounds = array<i64: 1, 32>}, {pipeline_mode = #tpu.pipeline_mode<synchronous>, transform_indices = @transform_17, window_bounds = array<i64: 1, 32>}, {pipeline_mode = #tpu.pipeline_mode<synchronous>, transform_indices = @transform_18, window_bounds = array<i64: 1, 32>}, {transform_indices = @transform_19, window_bounds = array<i64: 1, 8, 32>}]} {
    %c0_i32 = arith.constant 0 : i32
    %0 = arith.cmpi eq, %arg1, %c0_i32 : i32
    %1 = arith.extui %0 : i1 to i32
    %c0_i32_0 = arith.constant 0 : i32
    %2 = arith.cmpi ne, %1, %c0_i32_0 : i32
    scf.if %2 {
      %c0_94 = arith.constant 0 : index
      %c0_95 = arith.constant 0 : index
      %c0_96 = arith.constant 0 : index
      %188 = vector.load %arg2[%c0_94, %c0_95, %c0_96] : memref<1x16x32xbf16, #tpu.memory_space<vmem>>, vector<1x16x32xbf16>
      %189 = vector.shape_cast %188 : vector<1x16x32xbf16> to vector<16x32xbf16>
      %c0_97 = arith.constant 0 : index
      %c0_98 = arith.constant 0 : index
      %190 = vector.load %arg7[%c0_97, %c0_98] : memref<32x32xbf16, #tpu.memory_space<vmem>>, vector<32x32xbf16>
      %cst_99 = arith.constant dense<0.000000e+00> : vector<16x32xf32>
      %191 = tpu.matmul %189, %190, %cst_99 {dimension_numbers = #tpu.dot_dimension_numbers<[1], [0], [0], [1], [0, 0, 1, 1], [], []>} : vector<16x32xbf16>, vector<32x32xbf16>, vector<16x32xf32> -> vector<16x32xf32>
      %c0_100 = arith.constant 0 : index
      %c0_101 = arith.constant 0 : index
      %192 = vector.load %arg8[%c0_100, %c0_101] : memref<1x32xf32, #tpu.memory_space<vmem>>, vector<1x32xf32>
      %193 = vector.broadcast %192 : vector<1x32xf32> to vector<16x32xf32>
      %194 = arith.addf %191, %193 : vector<16x32xf32>
      %c0_102 = arith.constant 0 : index
      %c0_103 = arith.constant 0 : index
      %c0_104 = arith.constant 0 : index
      %195 = vector.load %arg3[%c0_102, %c0_103, %c0_104] : memref<1x16x32xbf16, #tpu.memory_space<vmem>>, vector<1x16x32xbf16>
      %196 = vector.shape_cast %195 : vector<1x16x32xbf16> to vector<16x32xbf16>
      %c0_105 = arith.constant 0 : index
      %c0_106 = arith.constant 0 : index
      %197 = vector.load %arg9[%c0_105, %c0_106] : memref<32x32xbf16, #tpu.memory_space<vmem>>, vector<32x32xbf16>
      %cst_107 = arith.constant dense<0.000000e+00> : vector<16x32xf32>
      %198 = tpu.matmul %196, %197, %cst_107 {dimension_numbers = #tpu.dot_dimension_numbers<[1], [0], [0], [1], [0, 0, 1, 1], [], []>} : vector<16x32xbf16>, vector<32x32xbf16>, vector<16x32xf32> -> vector<16x32xf32>
      %c0_108 = arith.constant 0 : index
      %c0_109 = arith.constant 0 : index
      %199 = vector.load %arg10[%c0_108, %c0_109] : memref<1x32xf32, #tpu.memory_space<vmem>>, vector<1x32xf32>
      %200 = vector.broadcast %199 : vector<1x32xf32> to vector<16x32xf32>
      %201 = arith.addf %198, %200 : vector<16x32xf32>
      %202 = arith.truncf %194 : vector<16x32xf32> to vector<16x32xbf16>
      %c0_110 = arith.constant 0 : index
      %c0_111 = arith.constant 0 : index
      %203 = vector.load %arg22[%c0_110, %c0_111] : memref<16x32xbf16, #tpu.memory_space<vmem>>, vector<16x32xbf16>
      tpu.vector_store %arg22[%c0_110, %c0_111], %202 {strides = array<i32>} : memref<16x32xbf16, #tpu.memory_space<vmem>>, vector<16x32xbf16>,
      %204 = arith.truncf %201 : vector<16x32xf32> to vector<16x32xbf16>
      %c0_112 = arith.constant 0 : index
      %c0_113 = arith.constant 0 : index
      %205 = vector.load %arg23[%c0_112, %c0_113] : memref<16x32xbf16, #tpu.memory_space<vmem>>, vector<16x32xbf16>
      tpu.vector_store %arg23[%c0_112, %c0_113], %204 {strides = array<i32>} : memref<16x32xbf16, #tpu.memory_space<vmem>>, vector<16x32xbf16>,
    } else {
    }
    %c8_i32 = arith.constant 8 : i32
    %3 = arith.muli %arg1, %c8_i32 : i32
    %4 = tpu.assume_multiple %3, 8 : i32
    %c0 = arith.constant 0 : index
    %5 = arith.index_cast %4 : i32 to index
    %c0_1 = arith.constant 0 : index
    %6 = vector.load %arg2[%c0, %5, %c0_1] : memref<1x16x32xbf16, #tpu.memory_space<vmem>>, vector<1x8x32xbf16>
    %7 = vector.shape_cast %6 : vector<1x8x32xbf16> to vector<8x32xbf16>
    %c0_2 = arith.constant 0 : index
    %c0_3 = arith.constant 0 : index
    %8 = vector.load %arg5[%c0_2, %c0_3] : memref<32x32xbf16, #tpu.memory_space<vmem>>, vector<32x32xbf16>
    %cst = arith.constant dense<0.000000e+00> : vector<8x32xf32>
    %9 = tpu.matmul %7, %8, %cst {dimension_numbers = #tpu.dot_dimension_numbers<[1], [0], [0], [1], [0, 0, 1, 1], [], []>} : vector<8x32xbf16>, vector<32x32xbf16>, vector<8x32xf32> -> vector<8x32xf32>
    %c0_4 = arith.constant 0 : index
    %c0_5 = arith.constant 0 : index
    %10 = vector.load %arg6[%c0_4, %c0_5] : memref<1x32xf32, #tpu.memory_space<vmem>>, vector<1x32xf32>
    %11 = vector.broadcast %10 : vector<1x32xf32> to vector<8x32xf32>
    %12 = arith.addf %9, %11 : vector<8x32xf32>
    %13 = vector.extract_strided_slice %12 {offsets = [0, 0], sizes = [8, 8], strides = [1, 1]} : vector<8x32xf32> to vector<8x8xf32>
    %14 = arith.truncf %13 : vector<8x8xf32> to vector<8x8xbf16>
    %c0_6 = arith.constant 0 : index
    %c0_7 = arith.constant 0 : index
    %15 = vector.load %arg22[%c0_6, %c0_7] : memref<16x32xbf16, #tpu.memory_space<vmem>>, vector<16x8xbf16>
    %c0_8 = arith.constant 0 : index
    %c0_9 = arith.constant 0 : index
    %16 = vector.load %arg23[%c0_8, %c0_9] : memref<16x32xbf16, #tpu.memory_space<vmem>>, vector<16x8xbf16>
    %cst_10 = arith.constant dense<0.000000e+00> : vector<8x16xf32>
    %17 = tpu.matmul %14, %15, %cst_10 {dimension_numbers = #tpu.dot_dimension_numbers<[1], [1], [0], [0], [0, 0, 1, 0], [], []>} : vector<8x8xbf16>, vector<16x8xbf16>, vector<8x16xf32> -> vector<8x16xf32>
    %cst_11 = arith.constant dense<0xFF800000> : vector<8xf32>
    %18 = vector.multi_reduction <maximumf>, %17, %cst_11 [1] : vector<8x16xf32> to vector<8xf32>
    %19 = vector.shape_cast %18 : vector<8xf32> to vector<8x1xf32>
    %20 = vector.broadcast %19 : vector<8x1xf32> to vector<8x16xf32>
    %21 = arith.subf %17, %20 : vector<8x16xf32>
    %22 = math.exp %21 : vector<8x16xf32>
    %cst_12 = arith.constant dense<0.000000e+00> : vector<8xf32>
    %23 = vector.multi_reduction <add>, %22, %cst_12 [1] : vector<8x16xf32> to vector<8xf32>
    %24 = vector.shape_cast %23 : vector<8xf32> to vector<8x1xf32>
    %25 = tpu.reciprocal %24 {approx = true} : vector<8x1xf32> -> vector<8x1xf32>
    %26 = arith.truncf %22 : vector<8x16xf32> to vector<8x16xbf16>
    %cst_13 = arith.constant dense<0.000000e+00> : vector<8x8xf32>
    %27 = tpu.matmul %26, %16, %cst_13 {dimension_numbers = #tpu.dot_dimension_numbers<[1], [0], [0], [1], [0, 0, 1, 1], [], []>} : vector<8x16xbf16>, vector<16x8xbf16>, vector<8x8xf32> -> vector<8x8xf32>
    %28 = vector.broadcast %25 : vector<8x1xf32> to vector<8x8xf32>
    %29 = arith.mulf %27, %28 : vector<8x8xf32>
    %30 = arith.truncf %29 : vector<8x8xf32> to vector<8x8xbf16>
    %c0_14 = arith.constant 0 : index
    %c0_15 = arith.constant 0 : index
    %31 = vector.load %arg24[%c0_14, %c0_15] : memref<8x32xbf16, #tpu.memory_space<vmem>>, vector<8x8xbf16>
    tpu.vector_store %arg24[%c0_14, %c0_15], %30 {strides = array<i32>} : memref<8x32xbf16, #tpu.memory_space<vmem>>, vector<8x8xbf16>,
    %32 = vector.extract_strided_slice %12 {offsets = [0, 8], sizes = [8, 8], strides = [1, 1]} : vector<8x32xf32> to vector<8x8xf32>
    %33 = arith.truncf %32 : vector<8x8xf32> to vector<8x8xbf16>
    %c0_16 = arith.constant 0 : index
    %c8 = arith.constant 8 : index
    %34 = vector.load %arg22[%c0_16, %c8] : memref<16x32xbf16, #tpu.memory_space<vmem>>, vector<16x8xbf16>
    %c0_17 = arith.constant 0 : index
    %c8_18 = arith.constant 8 : index
    %35 = vector.load %arg23[%c0_17, %c8_18] : memref<16x32xbf16, #tpu.memory_space<vmem>>, vector<16x8xbf16>
    %cst_19 = arith.constant dense<0.000000e+00> : vector<8x16xf32>
    %36 = tpu.matmul %33, %34, %cst_19 {dimension_numbers = #tpu.dot_dimension_numbers<[1], [1], [0], [0], [0, 0, 1, 0], [], []>} : vector<8x8xbf16>, vector<16x8xbf16>, vector<8x16xf32> -> vector<8x16xf32>
    %cst_20 = arith.constant dense<0xFF800000> : vector<8xf32>
    %37 = vector.multi_reduction <maximumf>, %36, %cst_20 [1] : vector<8x16xf32> to vector<8xf32>
    %38 = vector.shape_cast %37 : vector<8xf32> to vector<8x1xf32>
    %39 = vector.broadcast %38 : vector<8x1xf32> to vector<8x16xf32>
    %40 = arith.subf %36, %39 : vector<8x16xf32>
    %41 = math.exp %40 : vector<8x16xf32>
    %cst_21 = arith.constant dense<0.000000e+00> : vector<8xf32>
    %42 = vector.multi_reduction <add>, %41, %cst_21 [1] : vector<8x16xf32> to vector<8xf32>
    %43 = vector.shape_cast %42 : vector<8xf32> to vector<8x1xf32>
    %44 = tpu.reciprocal %43 {approx = true} : vector<8x1xf32> -> vector<8x1xf32>
    %45 = arith.truncf %41 : vector<8x16xf32> to vector<8x16xbf16>
    %cst_22 = arith.constant dense<0.000000e+00> : vector<8x8xf32>
    %46 = tpu.matmul %45, %35, %cst_22 {dimension_numbers = #tpu.dot_dimension_numbers<[1], [0], [0], [1], [0, 0, 1, 1], [], []>} : vector<8x16xbf16>, vector<16x8xbf16>, vector<8x8xf32> -> vector<8x8xf32>
    %47 = vector.broadcast %44 : vector<8x1xf32> to vector<8x8xf32>
    %48 = arith.mulf %46, %47 : vector<8x8xf32>
    %49 = arith.truncf %48 : vector<8x8xf32> to vector<8x8xbf16>
    %c0_23 = arith.constant 0 : index
    %c8_24 = arith.constant 8 : index
    %50 = vector.load %arg24[%c0_23, %c8_24] : memref<8x32xbf16, #tpu.memory_space<vmem>>, vector<8x8xbf16>
    tpu.vector_store %arg24[%c0_23, %c8_24], %49 {strides = array<i32>} : memref<8x32xbf16, #tpu.memory_space<vmem>>, vector<8x8xbf16>,
    %51 = vector.extract_strided_slice %12 {offsets = [0, 16], sizes = [8, 8], strides = [1, 1]} : vector<8x32xf32> to vector<8x8xf32>
    %52 = arith.truncf %51 : vector<8x8xf32> to vector<8x8xbf16>
    %c0_25 = arith.constant 0 : index
    %c16 = arith.constant 16 : index
    %53 = vector.load %arg22[%c0_25, %c16] : memref<16x32xbf16, #tpu.memory_space<vmem>>, vector<16x8xbf16>
    %c0_26 = arith.constant 0 : index
    %c16_27 = arith.constant 16 : index
    %54 = vector.load %arg23[%c0_26, %c16_27] : memref<16x32xbf16, #tpu.memory_space<vmem>>, vector<16x8xbf16>
    %cst_28 = arith.constant dense<0.000000e+00> : vector<8x16xf32>
    %55 = tpu.matmul %52, %53, %cst_28 {dimension_numbers = #tpu.dot_dimension_numbers<[1], [1], [0], [0], [0, 0, 1, 0], [], []>} : vector<8x8xbf16>, vector<16x8xbf16>, vector<8x16xf32> -> vector<8x16xf32>
    %cst_29 = arith.constant dense<0xFF800000> : vector<8xf32>
    %56 = vector.multi_reduction <maximumf>, %55, %cst_29 [1] : vector<8x16xf32> to vector<8xf32>
    %57 = vector.shape_cast %56 : vector<8xf32> to vector<8x1xf32>
    %58 = vector.broadcast %57 : vector<8x1xf32> to vector<8x16xf32>
    %59 = arith.subf %55, %58 : vector<8x16xf32>
    %60 = math.exp %59 : vector<8x16xf32>
    %cst_30 = arith.constant dense<0.000000e+00> : vector<8xf32>
    %61 = vector.multi_reduction <add>, %60, %cst_30 [1] : vector<8x16xf32> to vector<8xf32>
    %62 = vector.shape_cast %61 : vector<8xf32> to vector<8x1xf32>
    %63 = tpu.reciprocal %62 {approx = true} : vector<8x1xf32> -> vector<8x1xf32>
    %64 = arith.truncf %60 : vector<8x16xf32> to vector<8x16xbf16>
    %cst_31 = arith.constant dense<0.000000e+00> : vector<8x8xf32>
    %65 = tpu.matmul %64, %54, %cst_31 {dimension_numbers = #tpu.dot_dimension_numbers<[1], [0], [0], [1], [0, 0, 1, 1], [], []>} : vector<8x16xbf16>, vector<16x8xbf16>, vector<8x8xf32> -> vector<8x8xf32>
    %66 = vector.broadcast %63 : vector<8x1xf32> to vector<8x8xf32>
    %67 = arith.mulf %65, %66 : vector<8x8xf32>
    %68 = arith.truncf %67 : vector<8x8xf32> to vector<8x8xbf16>
    %c0_32 = arith.constant 0 : index
    %c16_33 = arith.constant 16 : index
    %69 = vector.load %arg24[%c0_32, %c16_33] : memref<8x32xbf16, #tpu.memory_space<vmem>>, vector<8x8xbf16>
    tpu.vector_store %arg24[%c0_32, %c16_33], %68 {strides = array<i32>} : memref<8x32xbf16, #tpu.memory_space<vmem>>, vector<8x8xbf16>,
    %70 = vector.extract_strided_slice %12 {offsets = [0, 24], sizes = [8, 8], strides = [1, 1]} : vector<8x32xf32> to vector<8x8xf32>
    %71 = arith.truncf %70 : vector<8x8xf32> to vector<8x8xbf16>
    %c0_34 = arith.constant 0 : index
    %c24 = arith.constant 24 : index
    %72 = vector.load %arg22[%c0_34, %c24] : memref<16x32xbf16, #tpu.memory_space<vmem>>, vector<16x8xbf16>
    %c0_35 = arith.constant 0 : index
    %c24_36 = arith.constant 24 : index
    %73 = vector.load %arg23[%c0_35, %c24_36] : memref<16x32xbf16, #tpu.memory_space<vmem>>, vector<16x8xbf16>
    %cst_37 = arith.constant dense<0.000000e+00> : vector<8x16xf32>
    %74 = tpu.matmul %71, %72, %cst_37 {dimension_numbers = #tpu.dot_dimension_numbers<[1], [1], [0], [0], [0, 0, 1, 0], [], []>} : vector<8x8xbf16>, vector<16x8xbf16>, vector<8x16xf32> -> vector<8x16xf32>
    %cst_38 = arith.constant dense<0xFF800000> : vector<8xf32>
    %75 = vector.multi_reduction <maximumf>, %74, %cst_38 [1] : vector<8x16xf32> to vector<8xf32>
    %76 = vector.shape_cast %75 : vector<8xf32> to vector<8x1xf32>
    %77 = vector.broadcast %76 : vector<8x1xf32> to vector<8x16xf32>
    %78 = arith.subf %74, %77 : vector<8x16xf32>
    %79 = math.exp %78 : vector<8x16xf32>
    %cst_39 = arith.constant dense<0.000000e+00> : vector<8xf32>
    %80 = vector.multi_reduction <add>, %79, %cst_39 [1] : vector<8x16xf32> to vector<8xf32>
    %81 = vector.shape_cast %80 : vector<8xf32> to vector<8x1xf32>
    %82 = tpu.reciprocal %81 {approx = true} : vector<8x1xf32> -> vector<8x1xf32>
    %83 = arith.truncf %79 : vector<8x16xf32> to vector<8x16xbf16>
    %cst_40 = arith.constant dense<0.000000e+00> : vector<8x8xf32>
    %84 = tpu.matmul %83, %73, %cst_40 {dimension_numbers = #tpu.dot_dimension_numbers<[1], [0], [0], [1], [0, 0, 1, 1], [], []>} : vector<8x16xbf16>, vector<16x8xbf16>, vector<8x8xf32> -> vector<8x8xf32>
    %85 = vector.broadcast %82 : vector<8x1xf32> to vector<8x8xf32>
    %86 = arith.mulf %84, %85 : vector<8x8xf32>
    %87 = arith.truncf %86 : vector<8x8xf32> to vector<8x8xbf16>
    %c0_41 = arith.constant 0 : index
    %c24_42 = arith.constant 24 : index
    %88 = vector.load %arg24[%c0_41, %c24_42] : memref<8x32xbf16, #tpu.memory_space<vmem>>, vector<8x8xbf16>
    tpu.vector_store %arg24[%c0_41, %c24_42], %87 {strides = array<i32>} : memref<8x32xbf16, #tpu.memory_space<vmem>>, vector<8x8xbf16>,
    %c0_43 = arith.constant 0 : index
    %c0_44 = arith.constant 0 : index
    %89 = vector.load %arg24[%c0_43, %c0_44] : memref<8x32xbf16, #tpu.memory_space<vmem>>, vector<8x32xbf16>
    %c0_45 = arith.constant 0 : index
    %c0_46 = arith.constant 0 : index
    %90 = vector.load %arg11[%c0_45, %c0_46] : memref<32x32xbf16, #tpu.memory_space<vmem>>, vector<32x32xbf16>
    %cst_47 = arith.constant dense<0.000000e+00> : vector<8x32xf32>
    %91 = tpu.matmul %89, %90, %cst_47 {dimension_numbers = #tpu.dot_dimension_numbers<[1], [0], [0], [1], [0, 0, 1, 1], [], []>} : vector<8x32xbf16>, vector<32x32xbf16>, vector<8x32xf32> -> vector<8x32xf32>
    %c0_48 = arith.constant 0 : index
    %c0_49 = arith.constant 0 : index
    %92 = vector.load %arg12[%c0_48, %c0_49] : memref<1x32xf32, #tpu.memory_space<vmem>>, vector<1x32xf32>
    %93 = vector.broadcast %92 : vector<1x32xf32> to vector<8x32xf32>
    %94 = arith.addf %91, %93 : vector<8x32xf32>
    %c0_50 = arith.constant 0 : index
    %c0_51 = arith.constant 0 : index
    %c0_52 = arith.constant 0 : index
    %95 = vector.load %arg4[%c0_50, %c0_51, %c0_52] : memref<1x8x32xf32, #tpu.memory_space<vmem>>, vector<1x8x32xf32>
    %96 = vector.shape_cast %95 : vector<1x8x32xf32> to vector<8x32xf32>
    %97 = arith.addf %96, %94 : vector<8x32xf32>
    %c0_53 = arith.constant 0 : index
    %c0_54 = arith.constant 0 : index
    %98 = vector.load %arg17[%c0_53, %c0_54] : memref<1x32xf32, #tpu.memory_space<vmem>>, vector<1x32xf32>
    %c0_55 = arith.constant 0 : index
    %c0_56 = arith.constant 0 : index
    %99 = vector.load %arg18[%c0_55, %c0_56] : memref<1x32xf32, #tpu.memory_space<vmem>>, vector<1x32xf32>
    %cst_57 = arith.constant dense<0.000000e+00> : vector<8xf32>
    %100 = vector.multi_reduction <add>, %97, %cst_57 [1] : vector<8x32xf32> to vector<8xf32>
    %101 = vector.shape_cast %100 : vector<8xf32> to vector<8x1xf32>
    %cst_58 = arith.constant 3.200000e+01 : f32
    %102 = vector.broadcast %cst_58 : f32 to vector<8x1xf32>
    %103 = arith.divf %101, %102 : vector<8x1xf32>
    %104 = vector.broadcast %103 : vector<8x1xf32> to vector<8x32xf32>
    %105 = arith.subf %97, %104 : vector<8x32xf32>
    %106 = arith.mulf %105, %105 : vector<8x32xf32>
    %cst_59 = arith.constant dense<0.000000e+00> : vector<8xf32>
    %107 = vector.multi_reduction <add>, %106, %cst_59 [1] : vector<8x32xf32> to vector<8xf32>
    %108 = vector.shape_cast %107 : vector<8xf32> to vector<8x1xf32>
    %cst_60 = arith.constant 3.200000e+01 : f32
    %109 = vector.broadcast %cst_60 : f32 to vector<8x1xf32>
    %110 = arith.divf %108, %109 : vector<8x1xf32>
    %111 = vector.broadcast %103 : vector<8x1xf32> to vector<8x32xf32>
    %112 = arith.subf %97, %111 : vector<8x32xf32>
    %cst_61 = arith.constant 9.99999974E-6 : f32
    %113 = vector.broadcast %cst_61 : f32 to vector<8x1xf32>
    %114 = arith.addf %110, %113 : vector<8x1xf32>
    %115 = math.rsqrt %114 : vector<8x1xf32>
    %116 = vector.broadcast %115 : vector<8x1xf32> to vector<8x32xf32>
    %117 = arith.mulf %112, %116 : vector<8x32xf32>
    %118 = vector.broadcast %98 : vector<1x32xf32> to vector<8x32xf32>
    %119 = arith.mulf %117, %118 : vector<8x32xf32>
    %120 = vector.broadcast %99 : vector<1x32xf32> to vector<8x32xf32>
    %121 = arith.addf %119, %120 : vector<8x32xf32>
    %122 = arith.truncf %121 : vector<8x32xf32> to vector<8x32xbf16>
    %c0_62 = arith.constant 0 : index
    %c0_63 = arith.constant 0 : index
    %123 = vector.load %arg13[%c0_62, %c0_63] : memref<32x64xbf16, #tpu.memory_space<vmem>>, vector<32x64xbf16>
    %cst_64 = arith.constant dense<0.000000e+00> : vector<8x64xf32>
    %124 = tpu.matmul %122, %123, %cst_64 {dimension_numbers = #tpu.dot_dimension_numbers<[1], [0], [0], [1], [0, 0, 1, 1], [], []>} : vector<8x32xbf16>, vector<32x64xbf16>, vector<8x64xf32> -> vector<8x64xf32>
    %c0_65 = arith.constant 0 : index
    %c0_66 = arith.constant 0 : index
    %125 = vector.load %arg14[%c0_65, %c0_66] : memref<1x64xf32, #tpu.memory_space<vmem>>, vector<1x64xf32>
    %126 = vector.broadcast %125 : vector<1x64xf32> to vector<8x64xf32>
    %127 = arith.addf %124, %126 : vector<8x64xf32>
    %cst_67 = arith.constant 0.000000e+00 : f32
    %128 = vector.broadcast %cst_67 : f32 to vector<8x64xf32>
    %129 = arith.maximumf %127, %128 : vector<8x64xf32>
    %130 = arith.truncf %129 : vector<8x64xf32> to vector<8x64xbf16>
    %c0_68 = arith.constant 0 : index
    %c0_69 = arith.constant 0 : index
    %131 = vector.load %arg15[%c0_68, %c0_69] : memref<64x32xbf16, #tpu.memory_space<vmem>>, vector<64x32xbf16>
    %cst_70 = arith.constant dense<0.000000e+00> : vector<8x32xf32>
    %132 = tpu.matmul %130, %131, %cst_70 {dimension_numbers = #tpu.dot_dimension_numbers<[1], [0], [0], [1], [0, 0, 1, 1], [], []>} : vector<8x64xbf16>, vector<64x32xbf16>, vector<8x32xf32> -> vector<8x32xf32>
    %c0_71 = arith.constant 0 : index
    %c0_72 = arith.constant 0 : index
    %133 = vector.load %arg16[%c0_71, %c0_72] : memref<1x32xf32, #tpu.memory_space<vmem>>, vector<1x32xf32>
    %134 = vector.broadcast %133 : vector<1x32xf32> to vector<8x32xf32>
    %135 = arith.addf %132, %134 : vector<8x32xf32>
    %136 = arith.addf %121, %135 : vector<8x32xf32>
    %c0_73 = arith.constant 0 : index
    %c0_74 = arith.constant 0 : index
    %137 = vector.load %arg19[%c0_73, %c0_74] : memref<1x32xf32, #tpu.memory_space<vmem>>, vector<1x32xf32>
    %c0_75 = arith.constant 0 : index
    %c0_76 = arith.constant 0 : index
    %138 = vector.load %arg20[%c0_75, %c0_76] : memref<1x32xf32, #tpu.memory_space<vmem>>, vector<1x32xf32>
    %cst_77 = arith.constant dense<0.000000e+00> : vector<8xf32>
    %139 = vector.multi_reduction <add>, %136, %cst_77 [1] : vector<8x32xf32> to vector<8xf32>
    %140 = vector.shape_cast %139 : vector<8xf32> to vector<8x1xf32>
    %cst_78 = arith.constant 3.200000e+01 : f32
    %141 = vector.broadcast %cst_78 : f32 to vector<8x1xf32>
    %142 = arith.divf %140, %141 : vector<8x1xf32>
    %143 = vector.broadcast %142 : vector<8x1xf32> to vector<8x32xf32>
    %144 = arith.subf %136, %143 : vector<8x32xf32>
    %145 = arith.mulf %144, %144 : vector<8x32xf32>
    %cst_79 = arith.constant dense<0.000000e+00> : vector<8xf32>
    %146 = vector.multi_reduction <add>, %145, %cst_79 [1] : vector<8x32xf32> to vector<8xf32>
    %147 = vector.shape_cast %146 : vector<8xf32> to vector<8x1xf32>
    %cst_80 = arith.constant 3.200000e+01 : f32
    %148 = vector.broadcast %cst_80 : f32 to vector<8x1xf32>
    %149 = arith.divf %147, %148 : vector<8x1xf32>
    %150 = vector.broadcast %142 : vector<8x1xf32> to vector<8x32xf32>
    %151 = arith.subf %136, %150 : vector<8x32xf32>
    %cst_81 = arith.constant 9.99999974E-6 : f32
    %152 = vector.broadcast %cst_81 : f32 to vector<8x1xf32>
    %153 = arith.addf %149, %152 : vector<8x1xf32>
    %154 = math.rsqrt %153 : vector<8x1xf32>
    %155 = vector.broadcast %154 : vector<8x1xf32> to vector<8x32xf32>
    %156 = arith.mulf %151, %155 : vector<8x32xf32>
    %157 = vector.broadcast %137 : vector<1x32xf32> to vector<8x32xf32>
    %158 = arith.mulf %156, %157 : vector<8x32xf32>
    %159 = vector.broadcast %138 : vector<1x32xf32> to vector<8x32xf32>
    %160 = arith.addf %158, %159 : vector<8x32xf32>
    %c0_82 = arith.constant 0 : index
    %c0_83 = arith.constant 0 : index
    %161 = vector.load %arg17[%c0_82, %c0_83] : memref<1x32xf32, #tpu.memory_space<vmem>>, vector<1x32xf32>
    %c0_84 = arith.constant 0 : index
    %c0_85 = arith.constant 0 : index
    %162 = vector.load %arg18[%c0_84, %c0_85] : memref<1x32xf32, #tpu.memory_space<vmem>>, vector<1x32xf32>
    %cst_86 = arith.constant dense<0.000000e+00> : vector<8xf32>
    %163 = vector.multi_reduction <add>, %160, %cst_86 [1] : vector<8x32xf32> to vector<8xf32>
    %164 = vector.shape_cast %163 : vector<8xf32> to vector<8x1xf32>
    %cst_87 = arith.constant 3.200000e+01 : f32
    %165 = vector.broadcast %cst_87 : f32 to vector<8x1xf32>
    %166 = arith.divf %164, %165 : vector<8x1xf32>
    %167 = vector.broadcast %166 : vector<8x1xf32> to vector<8x32xf32>
    %168 = arith.subf %160, %167 : vector<8x32xf32>
    %169 = arith.mulf %168, %168 : vector<8x32xf32>
    %cst_88 = arith.constant dense<0.000000e+00> : vector<8xf32>
    %170 = vector.multi_reduction <add>, %169, %cst_88 [1] : vector<8x32xf32> to vector<8xf32>
    %171 = vector.shape_cast %170 : vector<8xf32> to vector<8x1xf32>
    %cst_89 = arith.constant 3.200000e+01 : f32
    %172 = vector.broadcast %cst_89 : f32 to vector<8x1xf32>
    %173 = arith.divf %171, %172 : vector<8x1xf32>
    %174 = vector.broadcast %166 : vector<8x1xf32> to vector<8x32xf32>
    %175 = arith.subf %160, %174 : vector<8x32xf32>
    %cst_90 = arith.constant 9.99999974E-6 : f32
    %176 = vector.broadcast %cst_90 : f32 to vector<8x1xf32>
    %177 = arith.addf %173, %176 : vector<8x1xf32>
    %178 = math.rsqrt %177 : vector<8x1xf32>
    %179 = vector.broadcast %178 : vector<8x1xf32> to vector<8x32xf32>
    %180 = arith.mulf %175, %179 : vector<8x32xf32>
    %181 = vector.broadcast %161 : vector<1x32xf32> to vector<8x32xf32>
    %182 = arith.mulf %180, %181 : vector<8x32xf32>
    %183 = vector.broadcast %162 : vector<1x32xf32> to vector<8x32xf32>
    %184 = arith.addf %182, %183 : vector<8x32xf32>
    %c0_91 = arith.constant 0 : index
    %c0_92 = arith.constant 0 : index
    %c0_93 = arith.constant 0 : index
    %185 = vector.load %arg21[%c0_91, %c0_92, %c0_93] : memref<1x8x32xf32, #tpu.memory_space<vmem>>, vector<1x8x32xf32>
    %186 = vector.shape_cast %185 : vector<1x8x32xf32> to vector<8x32xf32>
    %187 = vector.shape_cast %184 : vector<8x32xf32> to vector<1x8x32xf32>
    tpu.vector_store %arg21[%c0_91, %c0_92, %c0_93], %187 {strides = array<i32>} : memref<1x8x32xf32, #tpu.memory_space<vmem>>, vector<1x8x32xf32>,
    return
  }
  func.func @transform_0(%arg0: i32, %arg1: i32) -> (i32, i32, i32) {
    %c0_i32 = arith.constant 0 : i32
    %c0_i32_0 = arith.constant 0 : i32
    %c0_i32_1 = arith.constant 0 : i32
    return %arg0, %c0_i32, %c0_i32_0 : i32, i32, i32
  }
  func.func @transform_1(%arg0: i32, %arg1: i32) -> (i32, i32, i32) {
    %c0_i32 = arith.constant 0 : i32
    %c0_i32_0 = arith.constant 0 : i32
    %c0_i32_1 = arith.constant 0 : i32
    return %arg0, %c0_i32, %c0_i32_0 : i32, i32, i32
  }
  func.func @transform_2(%arg0: i32, %arg1: i32) -> (i32, i32, i32) {
    %c0_i32 = arith.constant 0 : i32
    %c0_i32_0 = arith.constant 0 : i32
    return %arg0, %arg1, %c0_i32 : i32, i32, i32
  }
  func.func @transform_3(%arg0: i32, %arg1: i32) -> (i32, i32) {
    %c0_i32 = arith.constant 0 : i32
    %c0_i32_0 = arith.constant 0 : i32
    %c0_i32_1 = arith.constant 0 : i32
    return %c0_i32, %c0_i32_0 : i32, i32
  }
  func.func @transform_4(%arg0: i32, %arg1: i32) -> (i32, i32) {
    %c0_i32 = arith.constant 0 : i32
    %c0_i32_0 = arith.constant 0 : i32
    %c0_i32_1 = arith.constant 0 : i32
    return %c0_i32, %c0_i32_0 : i32, i32
  }
  func.func @transform_5(%arg0: i32, %arg1: i32) -> (i32, i32) {
    %c0_i32 = arith.constant 0 : i32
    %c0_i32_0 = arith.constant 0 : i32
    %c0_i32_1 = arith.constant 0 : i32
    return %c0_i32, %c0_i32_0 : i32, i32
  }
  func.func @transform_6(%arg0: i32, %arg1: i32) -> (i32, i32) {
    %c0_i32 = arith.constant 0 : i32
    %c0_i32_0 = arith.constant 0 : i32
    %c0_i32_1 = arith.constant 0 : i32
    return %c0_i32, %c0_i32_0 : i32, i32
  }
  func.func @transform_7(%arg0: i32, %arg1: i32) -> (i32, i32) {
    %c0_i32 = arith.constant 0 : i32
    %c0_i32_0 = arith.constant 0 : i32
    %c0_i32_1 = arith.constant 0 : i32
    return %c0_i32, %c0_i32_0 : i32, i32
  }
  func.func @transform_8(%arg0: i32, %arg1: i32) -> (i32, i32) {
    %c0_i32 = arith.constant 0 : i32
    %c0_i32_0 = arith.constant 0 : i32
    %c0_i32_1 = arith.constant 0 : i32
    return %c0_i32, %c0_i32_0 : i32, i32
  }
  func.func @transform_9(%arg0: i32, %arg1: i32) -> (i32, i32) {
    %c0_i32 = arith.constant 0 : i32
    %c0_i32_0 = arith.constant 0 : i32
    %c0_i32_1 = arith.constant 0 : i32
    return %c0_i32, %c0_i32_0 : i32, i32
  }
  func.func @transform_10(%arg0: i32, %arg1: i32) -> (i32, i32) {
    %c0_i32 = arith.constant 0 : i32
    %c0_i32_0 = arith.constant 0 : i32
    %c0_i32_1 = arith.constant 0 : i32
    return %c0_i32, %c0_i32_0 : i32, i32
  }
  func.func @transform_11(%arg0: i32, %arg1: i32) -> (i32, i32) {
    %c0_i32 = arith.constant 0 : i32
    %c0_i32_0 = arith.constant 0 : i32
    %c0_i32_1 = arith.constant 0 : i32
    return %c0_i32, %c0_i32_0 : i32, i32
  }
  func.func @transform_12(%arg0: i32, %arg1: i32) -> (i32, i32) {
    %c0_i32 = arith.constant 0 : i32
    %c0_i32_0 = arith.constant 0 : i32
    %c0_i32_1 = arith.constant 0 : i32
    return %c0_i32, %c0_i32_0 : i32, i32
  }
  func.func @transform_13(%arg0: i32, %arg1: i32) -> (i32, i32) {
    %c0_i32 = arith.constant 0 : i32
    %c0_i32_0 = arith.constant 0 : i32
    %c0_i32_1 = arith.constant 0 : i32
    return %c0_i32, %c0_i32_0 : i32, i32
  }
  func.func @transform_14(%arg0: i32, %arg1: i32) -> (i32, i32) {
    %c0_i32 = arith.constant 0 : i32
    %c0_i32_0 = arith.constant 0 : i32
    %c0_i32_1 = arith.constant 0 : i32
    return %c0_i32, %c0_i32_0 : i32, i32
  }
  func.func @transform_15(%arg0: i32, %arg1: i32) -> (i32, i32) {
    %c0_i32 = arith.constant 0 : i32
    %c0_i32_0 = arith.constant 0 : i32
    %c0_i32_1 = arith.constant 0 : i32
    return %c0_i32, %c0_i32_0 : i32, i32
  }
  func.func @transform_16(%arg0: i32, %arg1: i32) -> (i32, i32) {
    %c0_i32 = arith.constant 0 : i32
    %c0_i32_0 = arith.constant 0 : i32
    %c0_i32_1 = arith.constant 0 : i32
    return %c0_i32, %c0_i32_0 : i32, i32
  }
  func.func @transform_17(%arg0: i32, %arg1: i32) -> (i32, i32) {
    %c0_i32 = arith.constant 0 : i32
    %c0_i32_0 = arith.constant 0 : i32
    %c0_i32_1 = arith.constant 0 : i32
    return %c0_i32, %c0_i32_0 : i32, i32
  }
  func.func @transform_18(%arg0: i32, %arg1: i32) -> (i32, i32) {
    %c0_i32 = arith.constant 0 : i32
    %c0_i32_0 = arith.constant 0 : i32
    %c0_i32_1 = arith.constant 0 : i32
    return %c0_i32, %c0_i32_0 : i32, i32
  }
  func.func @transform_19(%arg0: i32, %arg1: i32) -> (i32, i32, i32) {
    %c0_i32 = arith.constant 0 : i32
    %c0_i32_0 = arith.constant 0 : i32
    return %arg0, %arg1, %c0_i32 : i32, i32, i32
  }
}

</mosaic_0001>

<bundles_post_ra>
// kernel: tpu_custom_call.1
= control target key start
LH: loop header
LB: loop body
LE: loop exit
PB: predicated region body
PF: predicated region fallthrough
CT: control target
= control target key end

     0   :  { %s2796_s0 = inlined_call_operand.vmem [shape: bf16[2,16,32], index: 0, kind: input, shape index: {}]   ;;  %s2797_s1 = inlined_call_operand.hbm [shape: bf16[2,16,32], index: 1, kind: input, shape index: {}]   ;;  %s2798_s2 = inlined_call_operand.vmem [shape: f32[2,16,32], index: 2, kind: input, shape index: {}]   ;;  %s2799_s3 = inlined_call_operand.hbm [shape: bf16[32,32], index: 3, kind: input, shape index: {}]   ;;  %s2800_s4 = inlined_call_operand.vmem [shape: f32[1,32], index: 4, kind: input, shape index: {}]   ;;  %s2801_s5 = inlined_call_operand.hbm [shape: bf16[32,32], index: 5, kind: input, shape index: {}]   ;;  %s2802_s6 = inlined_call_operand.vmem [shape: f32[1,32], index: 6, kind: input, shape index: {}]   ;;  %s2803_s7 = inlined_call_operand.hbm [shape: bf16[32,32], index: 7, kind: input, shape index: {}]   ;;  %s2804_s8 = inlined_call_operand.vmem [shape: f32[1,32], index: 8, kind: input, shape index: {}]   ;;  %s2805_s9 = inlined_call_operand.hbm [shape: bf16[32,32], index: 9, kind: input, shape index: {}]   ;;  %s2806_s10 = inlined_call_operand.vmem [shape: f32[1,32], index: 10, kind: input, shape index: {}]   ;;  %s2807_s11 = inlined_call_operand.hbm [shape: bf16[32,64], index: 11, kind: input, shape index: {}]   ;;  %s2808_s12 = inlined_call_operand.vmem [shape: f32[1,64], index: 12, kind: input, shape index: {}]   ;;  %s2809_s13 = inlined_call_operand.vmem [shape: bf16[64,32], index: 13, kind: input, shape index: {}]   ;;  %s2810_s14 = inlined_call_operand.vmem [shape: f32[1,32], index: 14, kind: input, shape index: {}]   ;;  %s2811_s15 = inlined_call_operand.vmem [shape: f32[1,32], index: 15, kind: input, shape index: {}]   ;;  %s2812_s16 = inlined_call_operand.vmem [shape: f32[1,32], index: 16, kind: input, shape index: {}]   ;;  %s2813_s17 = inlined_call_operand.vmem [shape: f32[1,32], index: 17, kind: input, shape index: {}]   ;;  %s2814_s18 = inlined_call_operand.vmem [shape: f32[1,32], index: 18, kind: input, shape index: {}]   ;;  %s2815_s19 = inlined_call_operand.hbm [shape: f32[2,16,32], index: 19, kind: output, shape index: {}]  }
   0x1   :  { %2824 = sst [smem:[#allocation25_spill]] %s2796_s0 }
   0x2   :  { %2825 = sst [smem:[#allocation26_spill]] %s2797_s1 }
   0x3   :  { %2826 = sst [smem:[#allocation27_spill]] %s2798_s2 }
   0x4   :  { %2827 = sst [smem:[#allocation28_spill]] %s2799_s3 }
   0x5   :  { %2828 = sst [smem:[#allocation29_spill]] %s2800_s4 }
   0x6   :  { %2829 = sst [smem:[#allocation30_spill]] %s2801_s5 }
   0x7   :  { %2830 = sst [smem:[#allocation31_spill]] %s2802_s6 }
   0x8   :  { %2831 = sst [smem:[#allocation32_spill]] %s2803_s7 }
   0x9   :  { %2832 = sst [smem:[#allocation33_spill]] %s2804_s8 }
   0xa   :  { %2833 = sst [smem:[#allocation34_spill]] %s2805_s9 }
   0xb   :  { %2834 = sst [smem:[#allocation35_spill]] %s2806_s10 }
   0xc   :  { %2835 = sst [smem:[#allocation36_spill]] %s2807_s11 }
   0xd   :  { %2836 = sst [smem:[#allocation37_spill]] %s2808_s12 }
   0xe   :  { %2837 = sst [smem:[#allocation38_spill]] %s2809_s13 }
   0xf   :  { %2838 = sst [smem:[#allocation39_spill]] %s2810_s14 }
  0x10   :  { %2839 = sst [smem:[#allocation40_spill]] %s2811_s15 }
  0x11   :  { %2840 = sst [smem:[#allocation41_spill]] %s2812_s16 }
  0x12   :  { %2841 = sst [smem:[#allocation42_spill]] %s2813_s17 }
  0x13   :  { %2842 = sst [smem:[#allocation43_spill]] %s2814_s18 }
  0x14   :  { %2843 = sst [smem:[#allocation44_spill]] %s2815_s19 }
  0x15   :  { %24 = vsyncpa [#allocation6], 0 }
  0x16   :  { %26 = vsyncpa [#allocation6 + $0x1], 0 }
  0x17   :  { %27 = vsyncpa [#allocation9], 0 }
  0x18   :  { %28 = vsyncpa [#allocation12], 0 }
  0x19   :  { %29 = vsyncpa [#allocation15], 0 }
  0x1a   :  { %30 = vsyncpa [#allocation7], 0 }
  0x1b   :  { %32 = vsyncpa [#allocation7 + $0x1], 0  ;;  %s2414_s0 = smov 0   ;;  %s2416_s30 = smov 0  }
  0x1c   :  { %s2418_s20 = smov 0   ;;  %s2420_s21 = smov 0  }
  0x1d   :  { %s2422_s1 = smov 0   ;;  %s2424_s22 = smov 0  }
  0x1e   :  { %s2426_s2 = smov 0   ;;  %s2428_s23 = smov 0  }
  0x1f   :  { %s2430_s24 = smov 0   ;;  %s2432_s25 = smov 0  }
  0x20   :  { %s2434_s3 = smov 0  }
  0x21 LB: > { %2844 = sst [smem:[#allocation22_spill]] %s2294_s25  ;;  %s1620_s26 = sadd.s32 4294967295, %s2298_s3   ;;  %s2298_s3 = sphi %s2434_s3, %s38_s3   ;;  %s2294_s25 = sphi %s2432_s25, %s2880_s25   ;;  %s2290_s24 = sphi %s2430_s24, %s2888_s24   ;;  %s2286_s23 = sphi %s2428_s23, %s2878_s23   ;;  %s2282_s2 = sphi %s2426_s2, %s2887_s2   ;;  %s2278_s22 = sphi %s2424_s22, %s2886_s22   ;;  %s2274_s1 = sphi %s2422_s1, %s2885_s1   ;;  %s2270_s21 = sphi %s2420_s21, %s2884_s21   ;;  %s2266_s20 = sphi %s2418_s20, %s2883_s20   ;;  %s2262_s30 = sphi %s2416_s30, %s2882_s30   ;;  %s2258_s0 = sphi %s2414_s0, %s2881_s0  }
  0x22   : > { %p1622_p0 = scmp.ge.s32.totalorder %s2298_s3, 1  ;;  %p2471_p1 = scmp.eq.s32.totalorder %s1620_s26, 0 }
  0x23   : > { %p2475_p2 = scmp.eq.s32.totalorder %s1620_s26, 3  ;;  %p499_p3 = scmp.lt.s32.totalorder %s2298_s3, 5 }
  0x24   : > { %s2847_s18 = sld [smem:[#allocation28_spill]]  ;;  %s2300_s12 = smov [#allocation8]  }
  0x25   : > { %p2483_p4 = pnand %p1622_p0, %p499_p3  ;;  %s512_s16 = sshll.u32 %s2300_s12, 4  ;;  %s513_s16 = int_to_ptr.vmem [resolvable:$true] %s512_s16 }
  0x26   : > { %s2850_s7 = sld [smem:[#allocation32_spill]]  ;;  %s2301_s19 = smov [#allocation11]  }
  0x27   : > { %p1812_p5 = pneg %p2483_p4  ;;  %s546_s29 = sshll.u32 %s2301_s19, 4  ;;  %s547_s29 = int_to_ptr.vmem [resolvable:$true] %s546_s29 }
  0x28   : > { %s2818_s10 = smov 64   ;;  %s2819_s12 = smov 4  }
  0x29   : > { %p2491_p6 = pnand %p1812_p5, %p2471_p1  ;;  %s2851_s5 = sld [smem:[#allocation30_spill]] }
  0x2a   : > { %s510_s17 = sshll.u32 %s2847_s18, 4  ;;  %s2304_s15 = smov [#allocation10]   ;;  %s511_s17 = int_to_ptr.hbm [resolvable:$true] %s510_s17 }
  0x2b   : > { %1815 = dma.hbm_to_vmem [thread:$0]  (!%p2491_p6), %s511_s17, 256, %s513_s16, [#allocation9], %s2818_s10, %s2818_s10, %s2819_s12  }
  0x2c   : > { %s544_s18 = sshll.u32 %s2850_s7, 4  ;;  %s529_s19 = sshll.u32 %s2304_s15, 4  ;;  %s545_s18 = int_to_ptr.hbm [resolvable:$true] %s544_s18  ;;  %s530_s19 = int_to_ptr.vmem [resolvable:$true] %s529_s19 }
  0x2d   : > { %1821 = dma.hbm_to_vmem [thread:$0]  (!%p2491_p6), %s545_s18, 256, %s547_s29, [#allocation12], %s2818_s10, %s2818_s10, %s2819_s12  }
  0x2e   : > { %s2852_s9 = sld [smem:[#allocation34_spill]]  ;;  %s2305_s18 = smov [#allocation13]  }
  0x2f   : > { %s527_s13 = sshll.u32 %s2851_s5, 4  ;;  %s2853_s11 = sld [smem:[#allocation36_spill]]  ;;  %s528_s13 = int_to_ptr.hbm [resolvable:$true] %s527_s13 }
  0x30   : > { %1818 = dma.hbm_to_vmem [thread:$0]  (!%p2491_p6), %s528_s13, 256, %s530_s19, [#allocation9], %s2818_s10, %s2818_s10, %s2819_s12  }
  0x31   : > { %s563_s6 = sshll.u32 %s2305_s18, 4  ;;  %s2306_s7 = smov [#allocation14]   ;;  %s564_s6 = int_to_ptr.vmem [resolvable:$true] %s563_s6 }
  0x32   : > { %s580_s29 = sshll.u32 %s2306_s7, 4  ;;  %s1621_s13 = sadd.s32 4294967294, %s2298_s3   ;;  %s581_s29 = int_to_ptr.vmem [resolvable:$true] %s580_s29 }
  0x33   : > { %s47_s15 = sadd.s32 1, %s2290_s24  ;;  %s50_s19 = sadd.s32 1, %s2294_s25 }
  0x34   : > { %s561_s16 = sshll.u32 %s2852_s9, 4  ;;  %p48_p7 = scmp.ge.s32.totalorder %s47_s15, 2  ;;  %s562_s16 = int_to_ptr.hbm [resolvable:$true] %s561_s16 }
  0x35   : > { %s578_s17 = sshll.u32 %s2853_s11, 4  ;;  %p90_p8 = scmp.ne.s32.totalorder %s2278_s22, %s2274_s1  ;;  %s579_s17 = int_to_ptr.hbm [resolvable:$true] %s578_s17 }
  0x36   : > { %1824 = dma.hbm_to_vmem [thread:$0]  (!%p2491_p6), %s562_s16, 256, %s564_s6, [#allocation12], %s2818_s10, %s2818_s10, %s2819_s12  }
  0x37   : > { %1827 = dma.hbm_to_vmem [thread:$0]  (!%p2491_p6), %s579_s17, 256, %s581_s29, [#allocation15], %s2818_s10, %s2818_s10, %s2819_s12  }
  0x38   : > { %s83_s16 = sadd.s32 1, %s2278_s22  ;;  %s2890_s15 = smov (%p48_p7, %s47_s15), 0 }
  0x39   : > { %2854 = sst [smem:[#allocation23_spill]] %s2890_s15  ;;  %s2892_s19 = smov (!%p48_p7, %s50_s19), %s2294_s25 }
  0x3a   : > { %p91_p9 = scmp.eq.s32.totalorder %s2298_s3, 0  ;;  %p96_p10 = scmp.ne.s32.totalorder %s2274_s1, %s2270_s21 }
  0x3b   : > { %p52_p11 = scmp.ge.s32.totalorder %s2892_s19, 2  ;;  %s471_s26 = ssub.s32 %s2290_s24, %s2890_s15 }
  0x3c   : > { %p2546_p12 = por %p91_p9, %p90_p8  ;;  %p2552_p13 = por %p2471_p1, %p96_p10 }
  0x3d   : > { %s2894_s19 = smov (%p52_p11, %s2892_s19), 0  ;;  %s475_s17 = sadd.s32 1, %s2266_s20 }
  0x3e   : > { %2857 = sst [smem:[#allocation24_spill]] %s2894_s19  ;;  %p485_p0 = scmp.ne.s32.totalorder %s2266_s20, %s2262_s30 }
  0x3f   : > { %s80_s21 = ssub.s32 %s2294_s25, %s2894_s19  ;;  %p491_p3 = scmp.ne.s32.totalorder %s2262_s30, %s2258_s0 }
  0x40   : > { %p81_p5 = scmp.eq.s32.totalorder %s80_s21, 0  ;;  %s472_s18 = sor.u32 %s471_s26, %s80_s21 }
  0x41   : > { %p473_p6 = scmp.eq.s32.totalorder %s472_s18, 0  ;;  %p2567_p7 = por %p2475_p2, %p485_p0 }
  0x42   : > { %s2572_s7 = scalar_select %p81_p5, %s2278_s22, %s83_s16  }
  0x43   : > { %s2575_s29 = scalar_select %p473_p6, %s2266_s20, %s475_s17  }
  0x44   : > { %p492_p8 = scmp.eq.s32.totalorder %s1621_s13, 3  ;;  %p1841_p9 = scmp.lt.s32.totalorder %s2298_s3, 4 }
  0x45   : > { %s623_s10 = sand.u32 1, %s2278_s22   ;;  %s1762_s12 = sshll.u32 %s2294_s25, 3 }
  0x46   : > { %p2580_p10 = por %p492_p8, %p491_p3  ;;  %s1629_s26 = sshll.u32 %s623_s10, 3 }
  0x47   : > { %s2860_s18 = sld [smem:[#allocation26_spill]]  ;;  %s627_s19 = scalar_lea.vmem [#allocation5], %s1629_s26 }
  0x48   : > { %s635_s16 = sshll.u32 %s627_s19, 4  ;;  %p1829_p2 = pnand %p1841_p9, %p2546_p12  ;;  %s636_s16 = int_to_ptr.vmem [resolvable:$true] %s635_s16 }
  0x49   : > { %s624_s13 = scalar_lea.sflag [#allocation6], %s623_s10  ;;  %s2861_s17 = smov 4  }
  0x4a   : > { %s2862_s15 = smov 64   ;;  %s660_s25 = sand.u32 (!%p2483_p4), 1, %s2274_s1  }
  0x4b   : > { %658 = sbr.rel (%p2483_p4) target bundleno = 2240 (0x8c0), region = 96  ;;  %s2595_s21 = sshll.u32 (!%p2483_p4), %s660_s25, 3 }
  0x4d   : > { %s632_s9 = scalar_lea.hbm %s2860_s18, %s1762_s12  ;;  %s664_s12 = scalar_lea.vmem (!%p2483_p4), [#allocation5], %s2595_s21 }
  0x4e   : > { %s633_s11 = sshll.u32 %s632_s9, 4  ;;  %s661_s9 = scalar_lea.sflag (!%p2483_p4), [#allocation6], %s660_s25  ;;  %s634_s11 = int_to_ptr.hbm [resolvable:$true] %s633_s11 }
  0x4f   : > { %1831 = dma.hbm_to_vmem [thread:$0]  (!%p1829_p2), %s634_s11, 128, %s636_s16, %s624_s13, %s2862_s15, %s2862_s15, %s2861_s17  }
  0x50   : > { %2237 = dma.done.wait (%p2552_p13), %s661_s9, 128  }
  0x51   : > { %2239 = vsyncadd (%p2552_p13), %s661_s9, 4294967168 }
  0x52   : > { %2241 = dma.done.wait (%p2471_p1), [#allocation9], 512  }
  0x53   : > { %2243 = vsyncadd (%p2471_p1), [#allocation9], 4294966784 }
  0x54   : > { %2245 = dma.done.wait (%p2471_p1), [#allocation12], 512  }
  0x55   : > { %2247 = vsyncadd (%p2471_p1), [#allocation12], 4294966784 }
  0x56   : > { %2249 = dma.done.wait (%p2471_p1), [#allocation15], 256  }
  0x57   : > { %2251 = vsyncadd (%p2471_p1), [#allocation15], 4294967040  ;;  %s2823_s10 = sand.u32 1, %s2262_s30   ;;  %p758_p4 = scmp.lt.s32.totalorder %s2286_s23, 1 }
  0x58   : > { %s2618_s11 = sshll.u32 %s2823_s10, 3  ;;  %p765_p11 = scmp.lt.s32.totalorder %s2282_s2, 1 }
  0x59   : > { %s759_s14 = scalar_select %p758_p4, %s2286_s23, 1 }
  0x5a   : > { %s766_s25 = scalar_select %p765_p11, %s2282_s2, 1 }
  0x5b   : > { %s1763_s15 = sshll.u32 %s759_s14, 3  ;;  %s1642_s19 = sshll.u32 %s759_s14, 1 }
  0x5c   : > { %s2863_s8 = sld [smem:[#allocation25_spill]]  ;;  %s768_s28 = sadd.s32 %s1642_s19, %s766_s25 }
  0x5d   : > { %s1643_s18 = sshll.u32 %s768_s28, 3  ;;  %s2864_s17 = sld [smem:[#allocation27_spill]] }
  0x5e   : > { %s757_s10 = scalar_lea.vmem [#allocation16], %s2618_s11  ;;  %p1644_p1 = scmp.ne.s32.totalorder %s2282_s2, 0 }
  0x5f   : > { %s2866_s27 = sld [smem:[#allocation33_spill]] (!%p1644_p1) }
  0x60   : > { %775 = sbr.rel (%p1644_p1) target bundleno = 249 (0xf9), region = 124 }
  0x62   : > { %s2626_s26 = scalar_lea.vmem %s2863_s8, %s1763_s15  ;;  %s2865_s15 = sld [smem:[#allocation31_spill]] (!%p1644_p1) }
  0x63   : > { %s2631_s9 = scalar_lea.vmem %s2864_s17, %s1643_s18 }
  0x65   : > { %v1766_v0 = vld [vmem:[#allocation10 + $0x8] sm:$0xff]  ;;  %v1769_v1 = vld [vmem:[#allocation11 + $0x8] sm:$0xff]  ;;  %v1765_v2 = vld [vmem:[#allocation10] sm:$0xff]  ;;  %vm803_vm0 = vcmask 261120   ;;  %vm867_vm1 = vcmask 257024  }
  0x66   : > { %813 = vmatpush.bf16.msra.mxu0 %v1766_v0  ;;  %857 = vmatpush.bf16.msra.mxu1 %v1769_v1  ;;  %v1768_v3 = vld [vmem:[#allocation11] sm:$0xff]  ;;  %v1767_v5 = vld [vmem:[%s664_s12] sm:$0xff] }
  0x67   : > { %v1764_v4 = vld [vmem:[%s2626_s26] sm:$0xff] }
  0x68   : > { %v1950_v6 = vld [vmem:[%s2865_s15] ss:$0 sm:$0xff] }
  0x69   : > { %v1951_v7 = vld [vmem:[%s2866_s27] ss:$0 sm:$0xff] }
  0x6a   : > { %814 = vmatpush.bf16.msra.mxu0 %v1765_v2  ;;  %858 = vmatpush.bf16.msra.mxu1 %v1768_v3 }
  0x6d   : > { %1657 = vmatmul.msk.bf16.vlgmr.msra.gmra.mxu0 %vm803_vm0, %v1764_v4  ;;  %1670 = vmatmul.msk.bf16.vlgmr.msra.gmra.mxu1 %vm803_vm0, %v1767_v5 }
  0xea   : > { %v816_v8 = vpop.f32.mrf.mxu0  ;;  %v860_v9 = vpop.f32.mrf.mxu1 }
  0xeb   : > { %v817_v10 = vadd.f32 %v1950_v6, %v816_v8  ;;  %v861_v11 = vadd.f32 %v1951_v7, %v860_v9 }
  0xed   : > { %v865_v12 = vpack.c.bf16 %v817_v10, %v817_v10  ;;  %v870_v13 = vpack.c.bf16 %v861_v11, %v861_v11 }
  0xef   : > { %868 = vst.msk [vmem:[#allocation2] sm:$0xf] %vm867_vm1, %v865_v12 }
  0xf0   : > { %872 = vst.msk [vmem:[#allocation3] sm:$0xf] %vm867_vm1, %v870_v13 }
  0xf2   : > { %v818_v14 = vpop.f32.mrf.mxu0  ;;  %v862_v15 = vpop.f32.mrf.mxu1 }
  0xf3   : > { %v819_v16 = vadd.f32 %v1950_v6, %v818_v14  ;;  %v863_v17 = vadd.f32 %v1951_v7, %v862_v15 }
  0xf5   : > { %v866_v18 = vpack.c.bf16 %v819_v16, %v819_v16  ;;  %v871_v19 = vpack.c.bf16 %v863_v17, %v863_v17 }
  0xf7   : > { %869 = vst.msk [vmem:[#allocation2 + $0x4] sm:$0xf] %vm867_vm1, %v866_v18 }
  0xf8   : > { %873 = vst.msk [vmem:[#allocation3 + $0x4] sm:$0xf] %vm867_vm1, %v871_v19 }
  0xf9 PF: > { %v1771_v20 = vld [vmem:[#allocation8 + $0x8] sm:$0xff]  ;;  %s1671_s21 = sshll.u32 %s2282_s2, 3  ;;  %vm927_vm2 = vcmask 64512   ;;  %v1770_v25 = vld [vmem:[#allocation8] sm:$0xff]  ;;  %s2307_s28 = smov 104   ;;  %vm900_vm3 = vcmask 261120  }
  0xfa   : > { %s875_s12 = sshra.s32 %s1671_s21, 3  ;;  %910 = vmatpush.bf16.msra.mxu0 %v1771_v20  ;;  %s2308_s16 = smov 112   ;;  %vm947_vm4 = vcmask 130048   ;;  %vm983_vm5 = vcmask 60416   ;;  %vm1059_vm6 = vcmask 126016   ;;  %vm1134_vm7 = vcmask 191616  }
  0xfb   : > { %s1672_s8 = sshll.u32 %s875_s12, 2  ;;  %s2309_s13 = smov 120   ;;  %vm1209_vm8 = vcmask 257216   ;;  %vm1364_vm13 = vcmask 523264  }
  0xfc   : > { %s878_s18 = scalar_lea.vmem %s2626_s26, %s1672_s8  ;;  %s2867_s14 = sld [smem:[#allocation29_spill]] }
  0xfd   : > { %v879_v27 = vld [vmem:[%s878_s18] sm:$0xf]  ;;  %s2310_s25 = smov 8   ;;  %s2311_s15 = smov 16  }
  0xfe   : > { %v1778_v21 = vld [vmem:[#allocation2] sm:$0xff]  ;;  %911 = vmatpush.bf16.msra.mxu0 %v1770_v25  ;;  %s2312_s19 = smov 24   ;;  %s2868_s21 = sld [smem:[#allocation35_spill]] }
  0xff   : > { %v1776_v22 = vld [vmem:[#allocation2] sm:$0xff]  ;;  %1147 = vrot.lane.b32.xlu1 %v1778_v21, %s2307_s28  ;;  %v1775_v45 = vld [vmem:[#allocation3] sm:$0xff]  ;;  %s2869_s8 = sld [smem:[#allocation38_spill]] }
 0x100   : > { %v1774_v23 = vld [vmem:[#allocation2] sm:$0xff]  ;;  %1072 = vrot.lane.b32.xlu2 %v1776_v22, %s2308_s16  ;;  %v1773_v48 = vld [vmem:[#allocation3] sm:$0xff]  ;;  %s2870_s17 = sld [smem:[#allocation40_spill]] }
 0x101   : > { %v1772_v24 = vld [vmem:[#allocation2] sm:$0xff]  ;;  %997 = vrot.lane.b32.xlu0 %v1774_v23, %s2309_s13  ;;  %1681 = vmatmul.msk.bf16.vlgmr.msra.gmra.mxu0 %vm900_vm3, %v879_v27  ;;  %v1779_v60 = vld [vmem:[#allocation3] sm:$0xff]  ;;  %s2872_s12 = sld [smem:[#allocation37_spill]] }
 0x102   : > { %v932_v26 = vsel %vm927_vm2, %v1772_v24, 0  ;;  %v1952_v30 = vld [vmem:[%s2867_s14] ss:$0 sm:$0xff]  ;;  %975 = vmatpush.bf16.msra.mxu2 %v1773_v48  ;;  %v1777_v63 = vld [vmem:[#allocation3] sm:$0xff]  ;;  %s2874_s26 = sld [smem:[#allocation42_spill]] }
 0x103   : > { %941 = vmatpush.bf16.xpose.msra.mxu1 %v932_v26 }
 0x15a   : > { %v1073_v28 = vpop.permute.xlu2 %1072 }
 0x15b   : > { %v1078_v29 = vsel %vm927_vm2, %v1073_v28, 0 }
 0x15c   : > { %1087 = vmatpush.bf16.xpose.msrb.mxu0 %v1078_v29 }
 0x171   : > { %v1148_v37 = vpop.permute.xlu1 %1147 }
 0x172   : > { %v1153_v38 = vsel %vm927_vm2, %v1148_v37, 0 }
 0x173   : > { %v998_v35 = vpop.permute.xlu0 %997 }
 0x174   : > { %v1003_v36 = vsel %vm927_vm2, %v998_v35, 0 }
 0x175   : > { %1012 = vmatpush.bf16.xpose.msra.mxu3 %v1003_v36 }
 0x17d   : > { %1162 = vmatpush.bf16.xpose.msrb.mxu3 %v1153_v38 }
 0x17e   : > { %v913_v31 = vpop.f32.mrf.mxu0 }
 0x17f   : > { %v914_v32 = vadd.f32 %v1952_v30, %v913_v31 }
 0x181   : > { %v917_v33 = vpack.c.bf16 %v914_v32, %v914_v32 }
 0x183   : > { %1065 = vrot.lane.b32.xlu2 %v917_v33, %s2308_s16  ;;  %1140 = vrot.lane.b32.xlu1 %v917_v33, %s2307_s28 }
 0x184   : > { %990 = vrot.lane.b32.xlu0 %v917_v33, %s2309_s13  ;;  %1686 = vmatmul.msk.bf16.vlgmr.msra.gmra.mxu1 %vm927_vm2, %v917_v33 }
 0x186   : > { %v915_v34 = vpop.f32.mrf.mxu0 }
 0x18b   : > { %1034 = vrot.lane.b32.xlu2 %v1775_v45, %s2309_s13 }
 0x1dd   : > { %v1066_v39 = vpop.permute.xlu2 %1065 }
 0x1de   : > { %1706 = vmatmul.msk.bf16.vlgmr.msrb.gmra.mxu0 %vm927_vm2, %v1066_v39 }
 0x1e5   : > { %v1035_v62 = vpop.permute.xlu2 %1034 }
 0x1e6   : > { %1047 = vmatpush.bf16.msrb.mxu2 %v1035_v62 }
 0x1f5   : > { %v1141_v43 = vpop.permute.xlu1 %1140 }
 0x1f6   : > { %v991_v40 = vpop.permute.xlu0 %990 }
 0x1f7   : > { %1696 = vmatmul.msk.bf16.vlgmr.msra.gmra.mxu3 %vm927_vm2, %v991_v40 }
 0x201   : > { %v943_v41 = vpop.f32.mrf.mxu1 }
 0x202   : > { %v948_v42 = vsel %vm947_vm4, %v943_v41, -inf }
 0x203   : > { %949 = vmax.xlane.f32.xlu0 %v948_v42 }
 0x207   : > { %1716 = vmatmul.msk.bf16.vlgmr.msrb.gmra.mxu3 %vm927_vm2, %v1141_v43 }
 0x209   : > { %v945_v44 = vpop.f32.mrf.mxu1 }
 0x25b   : > { %v1089_v46 = vpop.f32.mrf.mxu0 }
 0x25c   : > { %v1093_v47 = vsel %vm947_vm4, %v1089_v46, -inf }
 0x25d   : > { %1094 = vmax.xlane.f32.xlu0 %v1093_v47  ;;  %v1780_v47 = vld [vmem:[#allocation13] sm:$0xff] }
 0x263   : > { %v1091_v49 = vpop.f32.mrf.mxu0 }
 0x276   : > { %v950_v50 = vpop.xlane.xlu0 %949 }
 0x277   : > { %v951_v51 = vsub.f32 %v943_v41, %v950_v50 }
 0x279   : > { %v952_v52 = vmul.f32 1.442695, %v951_v51  ;;  %v1953_v51 = vld [vmem:[%s2868_s21] ss:$0 sm:$0xff] }
 0x27a   : > { %v1014_v53 = vpop.f32.mrf.mxu3 }
 0x27b   : > { %1960 = vpow2.f32 %v952_v52  ;;  %v1018_v54 = vsel %vm947_vm4, %v1014_v53, -inf }
 0x27c   : > { %1019 = vmax.xlane.f32.xlu1 %v1018_v54 }
 0x281   : > { %v1961_v55 = vpop.eup %1960 }
 0x282   : > { %v1016_v56 = vpop.f32.mrf.mxu3  ;;  %v958_v57 = vpack.c.bf16 %v1961_v55, %v1961_v55  ;;  %v954_v0 = vsel %vm947_vm4, %v1961_v55, 0.0 }
 0x284   : > { %1691 = vmatmul.msk.bf16.vlgmr.msra.gmra.mxu2 %vm947_vm4, %v958_v57 }
 0x28a   : > { %v1164_v58 = vpop.f32.mrf.mxu3 }
 0x28b   : > { %v1168_v59 = vsel %vm947_vm4, %v1164_v58, -inf }
 0x28c   : > { %1169 = vmax.xlane.f32.xlu2 %v1168_v59 }
 0x292   : > { %v1166_v61 = vpop.f32.mrf.mxu3 }
 0x295   : > { %1184 = vrot.lane.b32.xlu1 %v1779_v60, %s2307_s28 }
 0x2a4   : > { %1109 = vrot.lane.b32.xlu2 %v1777_v63, %s2308_s16  ;;  %s2873_s16 = sld [smem:[#allocation39_spill]] }
 0x2bf   : > { %955 = vadd.xlane.f32.xlu1 %v954_v0 }
 0x2d0   : > { %v1095_v1 = vpop.xlane.xlu0 %1094 }
 0x2d1   : > { %v1096_v2 = vsub.f32 %v1089_v46, %v1095_v1  ;;  %v1781_v46 = vld [vmem:[#allocation13 + $0x8] sm:$0xff] }
 0x2d2   : > { %1241 = vmatpush.bf16.msra.mxu0 %v1781_v46 }
 0x2d3   : > { %v1097_v3 = vmul.f32 1.442695, %v1096_v2 }
 0x2d5   : > { %1962 = vpow2.f32 %v1097_v3 }
 0x2d6   : > { %1242 = vmatpush.bf16.msra.mxu0 %v1780_v47 }
 0x2db   : > { %v1963_v4 = vpop.eup %1962 }
 0x2dc   : > { %v1099_v5 = vsel %vm947_vm4, %v1963_v4, 0.0  ;;  %v1103_v18 = vpack.c.bf16 %v1963_v4, %v1963_v4 }
 0x2dd   : > { %1100 = vadd.xlane.f32.xlu0 %v1099_v5 }
 0x2ef   : > { %v1020_v6 = vpop.xlane.xlu1 %1019 }
 0x2f0   : > { %v1021_v7 = vsub.f32 %v1014_v53, %v1020_v6  ;;  %v1248_v53 = vld [vmem:[%s2631_s9] sm:$0xff]  ;;  %v1783_v6 = vld [vmem:[#allocation14 + $0x8] sm:$0xff] }
 0x2f2   : > { %v1022_v8 = vmul.f32 1.442695, %v1021_v7  ;;  %v1782_v7 = vld [vmem:[#allocation14] sm:$0xff] }
 0x2f4   : > { %1964 = vpow2.f32 %v1022_v8  ;;  %v1787_v8 = vld [vmem:[%s2869_s8 + $0x18] sm:$0xff] }
 0x2f5   : > { %1372 = vmatpush.bf16.msra.mxu3 %v1787_v8 }
 0x2fa   : > { %v1965_v9 = vpop.eup %1964 }
 0x2fb   : > { %v1024_v10 = vsel %vm947_vm4, %v1965_v9, 0.0  ;;  %v1028_v11 = vpack.c.bf16 %v1965_v9, %v1965_v9 }
 0x2fc   : > { %1025 = vadd.xlane.f32.xlu0 %v1024_v10 }
 0x2fd   : > { %1701 = vmatmul.msk.bf16.vlgmr.msrb.gmra.mxu2 %vm947_vm4, %v1028_v11  ;;  %v1786_v11 = vld [vmem:[%s2869_s8 + $0x10] sm:$0xff] }
 0x2fe   : > { %1373 = vmatpush.bf16.msra.mxu3 %v1786_v11 }
 0x2ff   : > { %v1170_v12 = vpop.xlane.xlu2 %1169 }
 0x300   : > { %v1171_v13 = vsub.f32 %v1164_v58, %v1170_v12  ;;  %v2313_v58 = vmov 32.0  }
 0x302   : > { %v1172_v14 = vmul.f32 1.442695, %v1171_v13 }
 0x304   : > { %1966 = vpow2.f32 %v1172_v14 }
 0x307   : > { %v1110_v15 = vpop.permute.xlu2 %1109  ;;  %v977_v16 = vpop.f32.mrf.mxu2 }
 0x308   : > { %1122 = vmatpush.bf16.msrb.mxu1 %v1110_v15  ;;  %v1185_v17 = vpop.permute.xlu1 %1184 }
 0x309   : > { %1197 = vmatpush.bf16.msra.mxu2 %v1185_v17 }
 0x30a   : > { %v1967_v19 = vpop.eup %1966 }
 0x30b   : > { %v1178_v20 = vpack.c.bf16 %v1967_v19, %v1967_v19  ;;  %1711 = vmatmul.msk.bf16.vlgmr.msrb.gmra.mxu1 %vm947_vm4, %v1103_v18  ;;  %v1174_v21 = vsel %vm947_vm4, %v1967_v19, 0.0  ;;  %v2699_v19 = vld [vmem:[%s2870_s17] ss:$0 sm:$0xff] }
 0x30c   : > { %1175 = vadd.xlane.f32.xlu0 %v1174_v21  ;;  %1319 = vmatpush.bf16.msra.mxu1 %v1783_v6 }
 0x30d   : > { %1721 = vmatmul.msk.bf16.vlgmr.msra.gmra.mxu2 %vm947_vm4, %v1178_v20 }
 0x30f   : > { %v979_v22 = vpop.f32.mrf.mxu2 }
 0x310   : > { %1320 = vmatpush.bf16.msra.mxu1 %v1782_v7 }
 0x332   : > { %v956_v23 = vpop.xlane.xlu1 %955 }
 0x333   : > { %1968 = vrcp.f32 %v956_v23 }
 0x339   : > { %v1969_v24 = vpop.eup %1968 }
 0x33a   : > { %v981_v25 = vmul.f32 %v1969_v24, %v977_v16 }
 0x33c   : > { %v982_v26 = vpack.c.bf16 %v981_v25, %v981_v25 }
 0x33e   : > { %984 = vst.msk [vmem:[#allocation4] sm:$0xf] %vm983_vm5, %v982_v26  ;;  %v1785_v26 = vld [vmem:[%s2869_s8 + $0x8] sm:$0xff] }
 0x33f   : > { %1374 = vmatpush.bf16.msra.mxu3 %v1785_v26 }
 0x350   : > { %v1101_v27 = vpop.xlane.xlu0 %1100 }
 0x36f   : > { %v1026_v28 = vpop.xlane.xlu0 %1025 }
 0x370   : > { %1970 = vrcp.f32 %v1026_v28  ;;  %v1956_v28 = vld [vmem:[%s2872_s12] ss:$0 sm:$0xff]  ;;  %s2876_s12 = sld [smem:[#allocation44_spill]] }
 0x371   : > { %1972 = vrcp.f32 %v1101_v27  ;;  %v1784_v27 = vld [vmem:[%s2869_s8] sm:$0xff] }
 0x372   : > { %1375 = vmatpush.bf16.msra.mxu3 %v1784_v27 }
 0x376   : > { %v1971_v29 = vpop.eup %1970 }
 0x377   : > { %v1973_v34 = vpop.eup %1972 }
 0x37f   : > { %v1176_v33 = vpop.xlane.xlu0 %1175 }
 0x380   : > { %v1049_v30 = vpop.f32.mrf.mxu2  ;;  %1974 = vrcp.f32 %v1176_v33 }
 0x381   : > { %v1053_v31 = vmul.f32 %v1971_v29, %v1049_v30  ;;  %1976 = vrcp.f32 %v2313_v58 }
 0x383   : > { %v1054_v32 = vpack.c.bf16 %v1053_v31, %v1053_v31 }
 0x385   : > { %1056 = vrot.lane.b32.xlu2 %v1054_v32, %s2310_s25  ;;  %s2871_s25 = sld [smem:[#allocation41_spill]] }
 0x386   : > { %v1975_v39 = vpop.eup %1974 }
 0x387   : > { %v1977_v59 = vpop.eup %1976 }
 0x388   : > { %v1051_v35 = vpop.f32.mrf.mxu2  ;;  %v1124_v36 = vpop.f32.mrf.mxu1  ;;  %v1256_v60 = vmul.f32 32.0, %v1977_v59  ;;  %vm1260_vm9 = vweird.f32 %v1977_v59 }
 0x389   : > { %v1128_v37 = vmul.f32 %v1973_v34, %v1124_v36  ;;  %v1957_v34 = vld [vmem:[%s2873_s16] ss:$0 sm:$0xff] }
 0x38a   : > { %v1257_v61 = vsub.f32 1.0, %v1256_v60 }
 0x38b   : > { %v1129_v38 = vpack.c.bf16 %v1128_v37, %v1128_v37  ;;  %v2704_v21 = vld [vmem:[%s2871_s25] ss:$0 sm:$0xff]  ;;  %s2184_s25 = scalar_lea.hbm %s2876_s12, 32 }
 0x38c   : > { %v1258_v62 = vmul.f32 %v1977_v59, %v1257_v61 }
 0x38d   : > { %1131 = vrot.lane.b32.xlu0 %v1129_v38, %s2311_s15  ;;  %s2875_s15 = sld [smem:[#allocation43_spill]] }
 0x38e   : > { %v1259_v63 = vadd.f32 %v1977_v59, %v1258_v62 }
 0x390   : > { %v1126_v40 = vpop.f32.mrf.mxu1  ;;  %v1199_v41 = vpop.f32.mrf.mxu2  ;;  %v2685_v0 = vsel %vm1260_vm9, %v1977_v59, %v1259_v63 }
 0x391   : > { %v1203_v42 = vmul.f32 %v1975_v39, %v1199_v41 }
 0x393   : > { %v1204_v43 = vpack.c.bf16 %v1203_v42, %v1203_v42 }
 0x395   : > { %1206 = vrot.lane.b32.xlu2 %v1204_v43, %s2312_s19  ;;  %s1758_s19 = sshll.u32 %s2286_s23, 1  ;;  %s1454_s23 = sshll.u32 %s757_s10, 4  ;;  %s1455_s23 = int_to_ptr.vmem [resolvable:$true] %s1454_s23 }
 0x396   : > { %s1450_s4 = sadd.s32 %s2282_s2, %s1758_s19  ;;  %s2877_s2 = sand.u32 1, %s2262_s30  }
 0x397   : > { %s1759_s27 = sshll.u32 %s1450_s4, 3  ;;  %s1440_s16 = scalar_lea.sflag [#allocation7], %s2877_s2 }
 0x398   : > { %v1201_v44 = vpop.f32.mrf.mxu2  ;;  %s1452_s28 = scalar_lea.hbm %s2876_s12, %s1759_s27 }
 0x399   : > { %s1456_s18 = sshll.u32 %s1452_s28, 4  ;;  %s1457_s18 = int_to_ptr.hbm [resolvable:$true] %s1456_s18 }
 0x39a   : > { %s2178_s13 = sshra.s32 %s1457_s18, 4  ;;  %s2179_s13 = int_to_ptr.hbm [resolvable:$true] %s2178_s13 }
 0x39b   : > { %s2180_s17 = scalar_lea.hbm %s2179_s13, 8  ;;  %p2185_p3 = scmp.lt.s32.totalorder %s2179_s13, %s2876_s12 }
 0x39c   : > { %p2181_p12 = scmp.ne.s32.totalorder %s2179_s13, %s2180_s17  ;;  %p2186_p5 = scmp.lt.s32.totalorder %s2184_s25, %s2180_s17 }
 0x39e   : > { %p2182_p13 = pnand %p2181_p12, %p2567_p7  ;;  %p2187_p6 = por %p2186_p5, %p2185_p3 }
 0x3a0   : > { %p2183_p0 = pneg %p2182_p13 }
 0x3a2   : > { %p2188_p8 = pnand %p2187_p6, %p2183_p0 }
 0x3df   : > { %v1057_v45 = vpop.permute.xlu2 %1056 }
 0x3e0   : > { %1060 = vst.msk [vmem:[#allocation4] sm:$0xf] %vm1059_vm6, %v1057_v45 }
 0x3ef   : > { %v1207_v49 = vpop.permute.xlu2 %1206 }
 0x3ff   : > { %v1132_v48 = vpop.permute.xlu0 %1131 }
 0x400   : > { %1135 = vst.msk [vmem:[#allocation4] sm:$0xf] %vm1134_vm7, %v1132_v48 }
 0x401   : > { %1210 = vst.msk [vmem:[#allocation4] sm:$0xf] %vm1209_vm8, %v1207_v49 }
 0x408   : > { %v1211_v50 = vld [vmem:[#allocation4] sm:$0xf] }
 0x409   : > { %1730 = vmatmul.msk.bf16.vlgmr.msra.gmra.mxu0 %vm900_vm3, %v1211_v50 }
 0x486   : > { %v1244_v52 = vpop.f32.mrf.mxu0 }
 0x487   : > { %v1245_v54 = vadd.f32 %v1953_v51, %v1244_v52 }
 0x489   : > { %v1249_v55 = vadd.f32 %v1248_v53, %v1245_v54  ;;  %v1958_v54 = vld [vmem:[%s2874_s26] ss:$0 sm:$0xff] }
 0x48b   : > { %v1252_v56 = vsel %vm900_vm3, %v1249_v55, 0.0 }
 0x48c   : > { %1253 = vadd.xlane.f32.xlu2 %v1252_v56 }
 0x48e   : > { %v1246_v57 = vpop.f32.mrf.mxu0 }
 0x48f   : > { %v1959_v57 = vld [vmem:[%s2875_s15] ss:$0 sm:$0xff] }
 0x4ff   : > { %v1254_v1 = vpop.xlane.xlu2 %1253 }
 0x500   : > { %v1262_v2 = vmul.f32 %v2685_v0, %v1254_v1 }
 0x502   : > { %v1263_v3 = vsub.f32 %v1249_v55, %v1262_v2 }
 0x504   : > { %v1264_v4 = vmul.f32 %v1263_v3, %v1263_v3 }
 0x506   : > { %v1265_v5 = vsel %vm900_vm3, %v1264_v4, 0.0 }
 0x507   : > { %1266 = vadd.xlane.f32.xlu0 %v1265_v5 }
 0x57a   : > { %v1267_v9 = vpop.xlane.xlu0 %1266 }
 0x57b   : > { %v1268_v10 = vmul.f32 %v1267_v9, %v2685_v0 }
 0x57d   : > { %v1269_v12 = vadd.f32 1e-05, %v1268_v10 }
 0x57f   : > { %1978 = vrsqrt.f32 %v1269_v12  ;;  %vm1276_vm11 = vweird.f32 %v1269_v12 }
 0x585   : > { %v1979_v13 = vpop.eup %1978 }
 0x586   : > { %v1271_v14 = vmul.f32 %v1979_v13, %v1269_v12  ;;  %vm1277_vm10 = vweird.f32 %v1979_v13 }
 0x587   : > { %vm1278_vm12 = vmor %vm1276_vm11, %vm1277_vm10 }
 0x588   : > { %v1272_v15 = vmul.f32 %v1979_v13, %v1271_v14 }
 0x58a   : > { %v1273_v16 = vmul.f32 0.5, %v1272_v15 }
 0x58c   : > { %v1274_v17 = vsub.f32 1.5, %v1273_v16 }
 0x58e   : > { %v1275_v18 = vmul.f32 %v1979_v13, %v1274_v17 }
 0x590   : > { %v1279_v20 = vsel %vm1278_vm12, %v1979_v13, %v1275_v18 }
 0x591   : > { %v1280_v22 = vmul.f32 %v1279_v20, %v1263_v3 }
 0x593   : > { %v1284_v23 = vmul.f32 %v2699_v19, %v1280_v22 }
 0x595   : > { %v1288_v24 = vadd.f32 %v2704_v21, %v1284_v23 }
 0x597   : > { %v1289_v25 = vpack.c.bf16 %v1288_v24, %v1288_v24 }
 0x599   : > { %1739 = vmatmul.msk.bf16.vlgmr.msra.gmra.mxu1 %vm900_vm3, %v1289_v25 }
 0x616   : > { %v1322_v29 = vpop.f32.mrf.mxu1 }
 0x617   : > { %v1323_v30 = vadd.f32 %v1956_v28, %v1322_v29 }
 0x619   : > { %v1326_v31 = vmax.f32 %v1323_v30, 0.0 }
 0x61b   : > { %v1327_v32 = vpack.c.bf16 %v1326_v31, %v1326_v31 }
 0x61d   : > { %1756 = vmatmul.msk.bf16.vlgmr.msra.gmra.mxu3 %vm1364_vm13, %v1327_v32 }
 0x61e   : > { %v1324_v33 = vpop.f32.mrf.mxu1 }
 0x6a0   : > { %v1377_v35 = vpop.f32.mrf.mxu3 }
 0x6a1   : > { %v1378_v36 = vadd.f32 %v1957_v34, %v1377_v35 }
 0x6a3   : > { %v1381_v37 = vadd.f32 %v1378_v36, %v1288_v24 }
 0x6a5   : > { %v1384_v38 = vsel %vm900_vm3, %v1381_v37, 0.0 }
 0x6a6   : > { %1385 = vadd.xlane.f32.xlu1 %v1384_v38 }
 0x6a8   : > { %v1379_v39 = vpop.f32.mrf.mxu3 }
 0x719   : > { %v1386_v40 = vpop.xlane.xlu1 %1385 }
 0x71a   : > { %v1387_v41 = vmul.f32 %v1386_v40, %v2685_v0 }
 0x71c   : > { %v1388_v42 = vsub.f32 %v1381_v37, %v1387_v41 }
 0x71e   : > { %v1389_v43 = vmul.f32 %v1388_v42, %v1388_v42 }
 0x720   : > { %v1390_v44 = vsel %vm900_vm3, %v1389_v43, 0.0 }
 0x721   : > { %1391 = vadd.xlane.f32.xlu1 %v1390_v44 }
 0x794   : > { %v1392_v45 = vpop.xlane.xlu1 %1391 }
 0x795   : > { %v1393_v46 = vmul.f32 %v1392_v45, %v2685_v0 }
 0x797   : > { %v1394_v47 = vadd.f32 1e-05, %v1393_v46 }
 0x799   : > { %1980 = vrsqrt.f32 %v1394_v47  ;;  %vm1401_vm15 = vweird.f32 %v1394_v47 }
 0x79f   : > { %v1981_v48 = vpop.eup %1980 }
 0x7a0   : > { %v1396_v49 = vmul.f32 %v1981_v48, %v1394_v47  ;;  %vm1402_vm14 = vweird.f32 %v1981_v48 }
 0x7a1   : > { %vm1403_vm0 = vmor %vm1401_vm15, %vm1402_vm14 }
 0x7a2   : > { %v1397_v50 = vmul.f32 %v1981_v48, %v1396_v49 }
 0x7a4   : > { %v1398_v51 = vmul.f32 0.5, %v1397_v50 }
 0x7a6   : > { %v1399_v52 = vsub.f32 1.5, %v1398_v51 }
 0x7a8   : > { %v1400_v53 = vmul.f32 %v1981_v48, %v1399_v52 }
 0x7aa   : > { %v1404_v55 = vsel %vm1403_vm0, %v1981_v48, %v1400_v53 }
 0x7ab   : > { %v1405_v56 = vmul.f32 %v1404_v55, %v1388_v42 }
 0x7ad   : > { %v1409_v58 = vmul.f32 %v1958_v54, %v1405_v56 }
 0x7af   : > { %v1413_v59 = vadd.f32 %v1959_v57, %v1409_v58 }
 0x7b1   : > { %v1414_v60 = vsel %vm900_vm3, %v1413_v59, 0.0 }
 0x7b2   : > { %1415 = vadd.xlane.f32.xlu1 %v1414_v60 }
 0x825   : > { %v1416_v61 = vpop.xlane.xlu1 %1415 }
 0x826   : > { %v1417_v62 = vmul.f32 %v1416_v61, %v2685_v0 }
 0x828   : > { %v1418_v63 = vsub.f32 %v1413_v59, %v1417_v62 }
 0x82a   : > { %v1419_v1 = vmul.f32 %v1418_v63, %v1418_v63 }
 0x82c   : > { %v1420_v2 = vsel %vm900_vm3, %v1419_v1, 0.0 }
 0x82d   : > { %1421 = vadd.xlane.f32.xlu2 %v1420_v2 }
 0x8a0   : > { %v1422_v3 = vpop.xlane.xlu2 %1421 }
 0x8a1   : > { %v1423_v4 = vmul.f32 %v1422_v3, %v2685_v0 }
 0x8a3   : > { %v1424_v5 = vadd.f32 1e-05, %v1423_v4 }
 0x8a5   : > { %1982 = vrsqrt.f32 %v1424_v5  ;;  %vm1431_vm2 = vweird.f32 %v1424_v5 }
 0x8ab   : > { %v1983_v6 = vpop.eup %1982 }
 0x8ac   : > { %v1426_v7 = vmul.f32 %v1983_v6, %v1424_v5  ;;  %vm1432_vm1 = vweird.f32 %v1983_v6 }
 0x8ad   : > { %vm1433_vm4 = vmor %vm1431_vm2, %vm1432_vm1 }
 0x8ae   : > { %v1427_v8 = vmul.f32 %v1983_v6, %v1426_v7 }
 0x8b0   : > { %v1428_v9 = vmul.f32 0.5, %v1427_v8 }
 0x8b2   : > { %v1429_v10 = vsub.f32 1.5, %v1428_v9 }
 0x8b4   : > { %v1430_v11 = vmul.f32 %v1983_v6, %v1429_v10 }
 0x8b6   : > { %v1434_v0 = vsel %vm1433_vm4, %v1983_v6, %v1430_v11 }
 0x8b7   : > { %v1435_v12 = vmul.f32 %v1434_v0, %v1418_v63 }
 0x8b9   : > { %v1436_v13 = vmul.f32 %v2699_v19, %v1435_v12 }
 0x8bb   : > { %v1437_v14 = vadd.f32 %v2704_v21, %v1436_v13 }
 0x8bd   : > { %1438 = vst.msk [vmem:[%s757_s10] sm:$0xff] %vm900_vm3, %v1437_v14 }
 0x8be   : > { %2191 = shalt.err (!%p2188_p8)
}
 0x8bf   : > { %1810 = dma.vmem_to_hbm [thread:$0]  (%p2567_p7), %s1455_s23, 128, %s1457_s18, %s1440_s16  }
 0x8c0 PF: > { %p1847_p9 = scmp.ge.s32.totalorder %s2298_s3, 2  ;;  %s1468_s10 = sand.u32 1, %s2258_s0  }
 0x8c1   : > { %s1469_s11 = scalar_lea.sflag [#allocation7], %s1468_s10 }
 0x8c2   : > { %p1833_p2 = pnand %p1847_p9, %p2580_p10 }
 0x8c4   : > { %p1834_p4 = pneg %p1833_p2 }
 0x8c6   : > { %2253 = dma.done.wait (%p1834_p4), %s1469_s11, 128  }
 0x8c7   : > { %2255 = vsyncadd (%p1834_p4), %s1469_s11, 4294967168  ;;  %s38_s3 = sadd.s32 1, %s2298_s3   ;;  %s2878_s23 = sld [smem:[#allocation22_spill]] }
 0x8c8   : > { %p35_p11 = scmp.ge.s32.totalorder %s38_s3, 6   ;;  %s2879_s6 = sld [smem:[#allocation23_spill]] }
 0x8c9   : > { %s2880_s25 = sld [smem:[#allocation24_spill]]  ;;  %s2881_s0 = smov %s2262_s30 }
 0x8ca   : > { %s2882_s30 = smov %s2266_s20  ;;  %s2883_s20 = smov %s2575_s29 }
 0x8cb   : > { %s2884_s21 = smov %s2274_s1  ;;  %s2885_s1 = smov %s2278_s22 }
 0x8cc   : > { %s2886_s22 = smov %s2572_s7  ;;  %s2887_s2 = smov %s2290_s24 }
 0x8cd   :  { %37 = sbr.rel (!%p35_p11) target bundleno = 33 (0x21), region = 172 }
 0x8ce   : > { %s2888_s24 = smov %s2879_s6 }
 0x8d2   :  { %1475 = vsyncpa [#allocation6], 1 }
 0x8d3   :  { %1477 = vsyncpa [#allocation6 + $0x1], 1 }
 0x8d4   :  { %1478 = vsyncpa [#allocation9], 1 }
 0x8d5   :  { %1479 = vsyncpa [#allocation12], 1 }
 0x8d6   :  { %1480 = vsyncpa [#allocation15], 1 }
 0x8d7   :  { %1481 = vsyncpa [#allocation7], 1 }
 0x8d8   :  { %1483 = vsyncpa [#allocation7 + $0x1], 1 }

</bundles_post_ra>
